<compile_context>
chip_gen: v6e
topology: v6e:2x2x1
jax: 0.10.0
libtpu: 0.0.40
codegen_flags: <defaults>
</compile_context>

<pallas_src>
import numpy as np
import jax
import jax.numpy as jnp
from jax.experimental import pallas as pl
from jax.experimental.pallas import tpu as pltpu


def _round_up(x, m):
    return ((x + m - 1) // m) * m


def _pick_row_tile(n_pad):
    # n_pad is a multiple of 128; prefer 256-row tiles, fall back to 128.
    if n_pad >= 256 and n_pad % 256 == 0:
        return 256
    return 128


def _mi_stats_kernel(meta_ref, x_ref, labc_ref, labr_ref, out_ref):
    """Grid = (similarity block b, row tile j).

    out[k, g, h] accumulates over the (row-group g) x (col-group h) rectangle:
      k=0: softplus(-S) on label-positive, non-diagonal pairs
      k=1: softplus( S) on label-positive, non-diagonal pairs
      k=2: softplus( S) on all non-diagonal pairs
    The output block is VMEM-resident across j and flushed to HBM once per b.
    Padded rows/cols (index >= nv) are excluded by the rsel/csel `< nv`
    guards; padded labels are all -1, so pad-pad pairs compare equal -- the
    `< nv` guards are what keeps them out.  Do not remove them.
    """
    b = pl.program_id(0)
    j = pl.program_id(1)
    n1 = meta_ref[b, 0]          # rows/cols in the first label group
    nv = meta_ref[b, 1]          # valid (un-padded) rows/cols

    tm = labc_ref.shape[0]       # row-tile size (multiple of 8)
    n = x_ref.shape[0]           # padded N (multiple of 128)
    row0 = pl.multiple_of(j * tm, tm)

    # Row tile of S = Xn @ Xn^T (features already normalized + zero-padded).
    x_rows = x_ref[pl.ds(row0, tm), :]                               # (TM, Dp)
    s = jax.lax.dot_general(
        x_rows, x_ref[...], (((1,), (1,)), ((), ())),
        preferred_element_type=jnp.float32)                          # (TM, N)
    # NOTE: kept f32 (not bf16) -- bf16 inputs add ~0.3% relative error to
    # every softplus term, which exceeds the 1e-3 validation tolerance.

    # Single transcendental pair shared by softplus(S) and softplus(-S).
    t = jnp.log1p(jnp.exp(-jnp.abs(s)))
    spn = jnp.maximum(-s, 0.0) + t        # softplus(-S)
    sp = spn + s                          # softplus( S)

    # Label-equality and exact diagonal masks via implicit broadcasting.
    lab_eq = labc_ref[...] == labr_ref[...]           # (TM,1)==(1,N) -> (TM,N)
    row_ids = row0 + jax.lax.broadcasted_iota(jnp.int32, (tm, 1), 0)
    col_ids = jax.lax.broadcasted_iota(jnp.int32, (1, n), 1)
    not_diag = row_ids != col_ids                     # (TM, N)
    pos = lab_eq & not_diag

    # Row-group selector (2, TM): g0 = global row < n1, g1 = n1 <= row < nv.
    r_idx = row0 + jax.lax.broadcasted_iota(jnp.int32, (2, tm), 1)
    r_grp = jax.lax.broadcasted_iota(jnp.int32, (2, tm), 0)
    rsel = jnp.where(((r_grp == 0) & (r_idx < n1))
                     | ((r_grp == 1) & (r_idx >= n1) & (r_idx < nv)),
                     1.0, 0.0)
    # Column-group selector (N, 2).
    c_idx = jax.lax.broadcasted_iota(jnp.int32, (n, 2), 0)
    c_grp = jax.lax.broadcasted_iota(jnp.int32, (n, 2), 1)
    csel = jnp.where(((c_grp == 0) & (c_idx < n1))
                     | ((c_grp == 1) & (c_idx >= n1) & (c_idx < nv)),
                     1.0, 0.0)

    # Quadrant reduction on the MXU: tiny (2,TM) row selector FIRST, so the
    # big (TM,N) operand is consumed with few LHS pushes, then (2,N)x(N,2).
    def quad_reduce(mat):
        rm = jax.lax.dot_general(rsel, mat, (((1,), (0,)), ((), ())),
                                 preferred_element_type=jnp.float32)  # (2, N)
        return jax.lax.dot_general(rm, csel, (((1,), (0,)), ((), ())),
                                   preferred_element_type=jnp.float32)  # (2, 2)

    @pl.when(j == 0)
    def _():
        out_ref[...] = jnp.zeros_like(out_ref)

    # Each masked stat matrix is built immediately before its reduction so at
    # most one masked (TM,N) buffer is live alongside s / spn / sp.
    out_ref[0, :, :] += quad_reduce(jnp.where(pos, spn, 0.0))
    out_ref[1, :, :] += quad_reduce(jnp.where(pos, sp, 0.0))
    out_ref[2, :, :] += quad_reduce(jnp.where(not_diag, sp, 0.0))


def _fused_stats(mats, labels, n1s):
    """Single pallas_call over all 4 similarity blocks -> (4, 3, 2, 2) stats."""
    nb = len(mats)
    d = int(mats[0].shape[1])
    dp = _round_up(d, 128)                                    # lane-dense D
    nmax = _round_up(max(int(m.shape[0]) for m in mats), 128)  # lane-dense N
    tm = _pick_row_tile(nmax)

    def prep(m):
        m = m.astype(jnp.float32)
        sq = jnp.sum(m * m, axis=1, keepdims=True)
        mn = m * jax.lax.rsqrt(jnp.maximum(sq, 1e-24))         # L2 normalize
        return jnp.pad(mn, ((0, nmax - m.shape[0]), (0, dp - d)))

    xs = jnp.stack([prep(m) for m in mats], axis=0)            # (4, nmax, dp)
    labs = [jnp.pad(l.astype(jnp.int32), (0, nmax - l.shape[0]),
                    constant_values=-1) for l in labels]
    labc = jnp.stack([l.reshape(nmax, 1) for l in labs], axis=0)   # (4, nmax, 1)
    labr = jnp.stack([l.reshape(1, nmax) for l in labs], axis=0)   # (4, 1, nmax)
    meta = jnp.asarray([[n1, int(m.shape[0])] for n1, m in zip(n1s, mats)],
                       dtype=jnp.int32)

    # Raise the scoped-VMEM limit (defaults: 16/32/32 MiB on v5e/v6e/v7x):
    # ~100 MiB on 128-MiB chips, ~80% of physical on v7x (64 MiB) for headroom.
    try:
        cap = pltpu.get_tpu_info().vmem_capacity_bytes
        vmem_limit = int(min(100 * 1024 * 1024, cap * 4 // 5))
    except Exception:
        vmem_limit = 64 * 1024 * 1024

    return pl.pallas_call(
        _mi_stats_kernel,
        out_shape=jax.ShapeDtypeStruct((nb, 3, 2, 2), jnp.float32),
        grid_spec=pltpu.PrefetchScalarGridSpec(
            num_scalar_prefetch=1,
            grid=(nb, nmax // tm),
            in_specs=[
                # Full normalized feature block; block index constant over j,
                # so it is DMA'd once per b and stays resident.
                pl.BlockSpec((None, nmax, dp), lambda b, j, meta: (b, 0, 0)),
                # Per-tile (TM,1) column labels (avoids a full (N,1) block
                # padding to (N,128) lanes in VMEM).
                pl.BlockSpec((None, tm, 1), lambda b, j, meta: (b, j, 0)),
                # Lane-dense (1,N) row labels, constant over j.
                pl.BlockSpec((None, 1, nmax), lambda b, j, meta: (b, 0, 0)),
            ],
            out_specs=pl.BlockSpec((None, 3, 2, 2),
                                   lambda b, j, meta: (b, 0, 0, 0)),
        ),
        compiler_params=pltpu.CompilerParams(
            dimension_semantics=("parallel", "arbitrary"),
            vmem_limit_bytes=vmem_limit),
    )(meta, xs, labc, labr)


def _pos_pair_counts(labels, n1s):
    """(blocks, 2, 2) label-positive pair counts per quadrant, diag excluded.

    Counts never need the NxN score matrix, so they are computed here (plain
    JAX) instead of in the kernel.
    """
    out = []
    for lab, n1 in zip(labels, n1s):
        groups = [lab[:n1], lab[n1:]]
        rows = []
        for rg in range(2):
            cols = []
            for cg in range(2):
                c = jnp.sum((groups[rg][:, None] == groups[cg][None, :])
                            .astype(jnp.float32))
                if rg == cg:
                    # ul / lr quadrants contain the diagonal: every self-pair
                    # is label-equal, remove them.
                    c = c - jnp.float32(groups[rg].shape[0])
                cols.append(c)
            rows.append(jnp.stack(cols))
        out.append(jnp.stack(rows))
    return jnp.stack(out)                                     # (4, 2, 2)


_QUAD_IDX = {"ul": (0, 0), "ur": (0, 1), "ll": (1, 0), "lr": (1, 1)}


def _quad(stats, counts, b, quad, n1, n2):
    """Lower bound on JS divergence for one quadrant from the kernel stats."""
    rg, cg = _QUAD_IDX[quad]
    spn_pos = stats[b, 0, rg, cg]
    sp_pos = stats[b, 1, rg, cg]
    sp_all = stats[b, 2, rg, cg]
    n_pos = counts[b, rg, cg]
    if quad == "ul":
        n_total = n1 * (n1 - 1)
    elif quad == "lr":
        n_total = n2 * (n2 - 1)
    else:
        n_total = n1 * n2
    first = -spn_pos / n_pos
    second = (sp_all - sp_pos) / (jnp.float32(n_total) - n_pos)
    return first - second


def mi_loss(shallow_feat, deep_feat, labels_A, labels_B, mask_lab, ws_list):
    """JAX/Pallas equivalent of MIloss.forward."""
    d1, d2 = jnp.split(deep_feat, 2, axis=0)
    s1, s2 = jnp.split(shallow_feat, 2, axis=0)
    m = np.asarray(mask_lab, dtype=bool)

    deep_A = jnp.concatenate([d1[m], d2[m]], axis=0)
    deep_B = jnp.concatenate([d1[~m], d2[~m]], axis=0)
    shal_A = jnp.concatenate([s1[m], s2[m]], axis=0)
    shal_B = jnp.concatenate([s1[~m], s2[~m]], axis=0)

    lA = jnp.asarray(labels_A, dtype=jnp.int32)
    lB = jnp.asarray(labels_B, dtype=jnp.int32)
    nA = int(lA.shape[0])
    nB = int(lB.shape[0])

    mats = [
        jnp.concatenate([deep_A, shal_B], axis=0),   # 0: dAsB
        jnp.concatenate([deep_B, shal_A], axis=0),   # 1: dBsA
        jnp.concatenate([deep_A, shal_A], axis=0),   # 2: dAsA
        jnp.concatenate([deep_B, shal_B], axis=0),   # 3: dBsB
    ]
    labels = [
        jnp.concatenate([lA, lB]),
        jnp.concatenate([lB, lA]),
        jnp.concatenate([lA, lA]),
        jnp.concatenate([lB, lB]),
    ]
    n1s = [nA, nB, nA, nB]

    stats = _fused_stats(mats, labels, n1s)          # (4 blocks, 3 stats, 2, 2)
    counts = _pos_pair_counts(labels, n1s)           # (4 blocks, 2, 2)

    ws = [jnp.float32(w) for w in ws_list]
    loss1 = ws[0] * _quad(stats, counts, 0, "ul", nA, nB) \
          + ws[1] * _quad(stats, counts, 0, "lr", nA, nB)
    loss1 = loss1 + ws[2] * _quad(stats, counts, 1, "ul", nB, nA) \
                  + ws[3] * _quad(stats, counts, 1, "lr", nB, nA)
    loss2 = ws[4] * _quad(stats, counts, 0, "ur", nA, nB) \
          + ws[5] * _quad(stats, counts, 0, "ll", nA, nB)
    loss2 = loss2 + ws[6] * _quad(stats, counts, 1, "ur", nB, nA) \
                  + ws[7] * _quad(stats, counts, 1, "ll", nB, nA)
    loss3 = ws[8] * _quad(stats, counts, 2, "ur", nA, nA) \
          + ws[9] * _quad(stats, counts, 2, "ll", nA, nA)
    loss4 = ws[10] * _quad(stats, counts, 3, "ur", nB, nB) \
          + ws[11] * _quad(stats, counts, 3, "ll", nB, nB)
    return loss1 + loss2 + loss3 + loss4


# ------------------------- pure-numpy reference -------------------------
def _np_softplus(x):
    return np.maximum(x, 0.0) + np.log1p(np.exp(-np.abs(x)))


def _np_djs(scores, cls_mask):
    pos = scores[cls_mask]
    nn = pos.size
    first = -_np_softplus(-pos).mean()
    second = (_np_softplus(scores).sum() - _np_softplus(pos).sum()) / (scores.size - nn)
    return first - second


def _np_partition(mat, n1):
    return mat[:n1, :n1], mat[:n1, n1:], mat[n1:, :n1], mat[n1:, n1:]


def _np_partition_and_mask(sim, labels_first, labels_second):
    n1 = labels_first.shape[0]
    n2 = labels_second.shape[0]
    labels = np.concatenate([labels_first, labels_second])
    lab_mask = labels[None, :] == labels[:, None]
    diag = np.eye(labels.shape[0], dtype=bool)
    sm = list(_np_partition(sim, n1))
    dg = _np_partition(diag, n1)
    lb = list(_np_partition(lab_mask, n1))
    sm[0] = sm[0][~dg[0]].reshape(n1, -1)
    sm[3] = sm[3][~dg[3]].reshape(n2, -1)
    sm[1] = sm[1].reshape(n1, -1)
    sm[2] = sm[2].reshape(n2, -1)
    lb[0] = lb[0][~dg[0]].reshape(n1, -1)
    lb[3] = lb[3][~dg[3]].reshape(n2, -1)
    lb[1] = lb[1].reshape(n1, -1)
    lb[2] = lb[2].reshape(n2, -1)
    return sm, lb


def _np_ref_loss(shallow, deep, lA, lB, mask, ws):
    d1, d2 = np.split(deep, 2, axis=0)
    s1, s2 = np.split(shallow, 2, axis=0)
    deep_A = np.concatenate([d1[mask], d2[mask]], 0)
    deep_B = np.concatenate([d1[~mask], d2[~mask]], 0)
    shal_A = np.concatenate([s1[mask], s2[mask]], 0)
    shal_B = np.concatenate([s1[~mask], s2[~mask]], 0)

    def norm(x):
        n = np.linalg.norm(x, axis=1, keepdims=True)
        return x / np.maximum(n, 1e-12)

    dAsB = norm(np.concatenate([deep_A, shal_B], 0))
    dBsA = norm(np.concatenate([deep_B, shal_A], 0))
    dAsA = norm(np.concatenate([deep_A, shal_A], 0))
    dBsB = norm(np.concatenate([deep_B, shal_B], 0))

    sm1, lb1 = _np_partition_and_mask(dAsB @ dAsB.T, lA, lB)
    sm2, lb2 = _np_partition_and_mask(dBsA @ dBsA.T, lB, lA)
    sm3, lb3 = _np_partition_and_mask(dAsA @ dAsA.T, lA, lA)
    sm4, lb4 = _np_partition_and_mask(dBsB @ dBsB.T, lB, lB)

    loss1 = ws[0] * _np_djs(sm1[0], lb1[0]) + ws[1] * _np_djs(sm1[3], lb1[3])
    loss1 += ws[2] * _np_djs(sm2[0], lb2[0]) + ws[3] * _np_djs(sm2[3], lb2[3])
    loss2 = ws[4] * _np_djs(sm1[1], lb1[1]) + ws[5] * _np_djs(sm1[2], lb1[2])
    loss2 += ws[6] * _np_djs(sm2[1], lb2[1]) + ws[7] * _np_djs(sm2[2], lb2[2])
    loss3 = ws[8] * _np_djs(sm3[1], lb3[1]) + ws[9] * _np_djs(sm3[2], lb3[2])
    loss4 = ws[10] * _np_djs(sm4[1], lb4[1]) + ws[11] * _np_djs(sm4[2], lb4[2])
    return loss1 + loss2 + loss3 + loss4


if __name__ == "__main__":
    key = jax.random.PRNGKey(0)
    B = 8   # samples per view (deep/shallow feats have 2*B rows = two views)
    D = 32  # feature dim
    k1, k2 = jax.random.split(key)
    deep_feat = jax.random.normal(k1, (2 * B, D), dtype=jnp.float32)
    shallow_feat = jax.random.normal(k2, (2 * B, D), dtype=jnp.float32)

    # 4 labelled + 4 unlabelled samples per view
    mask_lab = np.array([True, True, True, True, False, False, False, False])
    # labels for labelled / unlabelled subsets, duplicated for the two views
    labels_A = jnp.array([0, 1, 0, 2, 0, 1, 0, 2], dtype=jnp.int32)
    labels_B = jnp.array([1, 2, 0, 1, 1, 2, 0, 1], dtype=jnp.int32)
    # deterministic loss weights (stand-in for ws_list)
    ws_list = [0.25 + 0.05 * i for i in range(12)]

    loss = mi_loss(shallow_feat, deep_feat, labels_A, labels_B, mask_lab, ws_list)
    loss = jax.block_until_ready(loss)

    ref = _np_ref_loss(
        np.asarray(shallow_feat, np.float64),
        np.asarray(deep_feat, np.float64),
        np.asarray(labels_A),
        np.asarray(labels_B),
        mask_lab,
        ws_list,
    )
    assert np.isfinite(float(loss))
    assert abs(float(loss) - float(ref)) < 1e-3, (float(loss), float(ref))
    print("KERNEL_OK")
</pallas_src>

<mosaic_0001>
module attributes {stable_mosaic.version = 11 : i64} {
  func.func @_mi_stats_kernel(%arg0: i32, %arg1: i32, %arg2: memref<4x2xi32, #tpu.memory_space<smem>>, %arg3: memref<1x128x128xf32, #tpu.memory_space<vmem>>, %arg4: memref<1x128x1xi32, #tpu.memory_space<vmem>>, %arg5: memref<1x1x128xi32, #tpu.memory_space<vmem>>, %arg6: memref<1x3x2x2xf32, #tpu.memory_space<vmem>>) attributes {dimension_semantics = [#tpu.dimension_semantics<parallel>, #tpu.dimension_semantics<arbitrary>], iteration_bounds = array<i64: 4, 1>, scalar_prefetch = 1 : i64, scratch_operands = 0 : i64, tpu.core_type = #tpu.core_type<tc>, window_params = [{transform_indices = @transform_0, window_bounds = array<i64: 1, 128, 128>}, {transform_indices = @transform_1, window_bounds = array<i64: 1, 128, 1>}, {transform_indices = @transform_2, window_bounds = array<i64: 1, 1, 128>}, {transform_indices = @transform_3, window_bounds = array<i64: 1, 3, 2, 2>}]} {
    %0 = arith.index_cast %arg0 : i32 to index
    %c0 = arith.constant 0 : index
    %1 = memref.load %arg2[%0, %c0] : memref<4x2xi32, #tpu.memory_space<smem>>
    %2 = arith.index_cast %arg0 : i32 to index
    %c1 = arith.constant 1 : index
    %3 = memref.load %arg2[%2, %c1] : memref<4x2xi32, #tpu.memory_space<smem>>
    %c128_i32 = arith.constant 128 : i32
    %4 = arith.muli %arg1, %c128_i32 : i32
    %5 = tpu.assume_multiple %4, 128 : i32
    %c0_0 = arith.constant 0 : index
    %6 = arith.index_cast %5 : i32 to index
    %c0_1 = arith.constant 0 : index
    %7 = vector.load %arg3[%c0_0, %6, %c0_1] : memref<1x128x128xf32, #tpu.memory_space<vmem>>, vector<1x128x128xf32>
    %8 = vector.shape_cast %7 : vector<1x128x128xf32> to vector<128x128xf32>
    %c0_2 = arith.constant 0 : index
    %c0_3 = arith.constant 0 : index
    %c0_4 = arith.constant 0 : index
    %9 = vector.load %arg3[%c0_2, %c0_3, %c0_4] : memref<1x128x128xf32, #tpu.memory_space<vmem>>, vector<1x128x128xf32>
    %10 = vector.shape_cast %9 : vector<1x128x128xf32> to vector<128x128xf32>
    %cst = arith.constant dense<0.000000e+00> : vector<128x128xf32>
    %11 = tpu.matmul %8, %10, %cst {dimension_numbers = #tpu.dot_dimension_numbers<[1], [1], [0], [0], [0, 0, 1, 0], [], []>} : vector<128x128xf32>, vector<128x128xf32>, vector<128x128xf32> -> vector<128x128xf32>
    %12 = math.absf %11 : vector<128x128xf32>
    %cst_5 = arith.constant 0.000000e+00 : f32
    %13 = vector.broadcast %cst_5 : f32 to vector<128x128xf32>
    %14 = arith.subf %13, %12 : vector<128x128xf32>
    %15 = math.exp %14 : vector<128x128xf32>
    %16 = math.log1p %15 : vector<128x128xf32>
    %cst_6 = arith.constant 0.000000e+00 : f32
    %17 = vector.broadcast %cst_6 : f32 to vector<128x128xf32>
    %18 = arith.subf %17, %11 : vector<128x128xf32>
    %cst_7 = arith.constant 0.000000e+00 : f32
    %19 = vector.broadcast %cst_7 : f32 to vector<128x128xf32>
    %20 = arith.maximumf %18, %19 : vector<128x128xf32>
    %21 = arith.addf %20, %16 : vector<128x128xf32>
    %22 = arith.addf %21, %11 : vector<128x128xf32>
    %c0_8 = arith.constant 0 : index
    %c0_9 = arith.constant 0 : index
    %c0_10 = arith.constant 0 : index
    %23 = vector.load %arg4[%c0_8, %c0_9, %c0_10] : memref<1x128x1xi32, #tpu.memory_space<vmem>>, vector<1x128x1xi32>
    %24 = vector.shape_cast %23 : vector<1x128x1xi32> to vector<128x1xi32>
    %c0_11 = arith.constant 0 : index
    %c0_12 = arith.constant 0 : index
    %c0_13 = arith.constant 0 : index
    %25 = vector.load %arg5[%c0_11, %c0_12, %c0_13] : memref<1x1x128xi32, #tpu.memory_space<vmem>>, vector<1x1x128xi32>
    %26 = vector.shape_cast %25 : vector<1x1x128xi32> to vector<1x128xi32>
    %27 = vector.broadcast %24 : vector<128x1xi32> to vector<128x128xi32>
    %28 = vector.broadcast %26 : vector<1x128xi32> to vector<128x128xi32>
    %29 = arith.cmpi eq, %27, %28 : vector<128x128xi32>
    %30 = tpu.iota {dimensions = array<i32: 0>} : vector<128x1xi32>
    %31 = vector.broadcast %5 : i32 to vector<128x1xi32>
    %32 = arith.addi %31, %30 : vector<128x1xi32>
    %33 = tpu.iota {dimensions = array<i32: 1>} : vector<1x128xi32>
    %34 = vector.broadcast %32 : vector<128x1xi32> to vector<128x128xi32>
    %35 = vector.broadcast %33 : vector<1x128xi32> to vector<128x128xi32>
    %36 = arith.cmpi ne, %34, %35 : vector<128x128xi32>
    %37 = arith.andi %29, %36 : vector<128x128xi1>
    %38 = tpu.iota {dimensions = array<i32: 1>} : vector<2x128xi32>
    %39 = vector.broadcast %5 : i32 to vector<2x128xi32>
    %40 = arith.addi %39, %38 : vector<2x128xi32>
    %41 = tpu.iota {dimensions = array<i32: 0>} : vector<2x128xi32>
    %c0_i32 = arith.constant 0 : i32
    %42 = vector.broadcast %c0_i32 : i32 to vector<2x128xi32>
    %43 = arith.cmpi eq, %41, %42 : vector<2x128xi32>
    %44 = vector.broadcast %1 : i32 to vector<2x128xi32>
    %45 = arith.cmpi slt, %40, %44 : vector<2x128xi32>
    %46 = arith.andi %43, %45 : vector<2x128xi1>
    %c1_i32 = arith.constant 1 : i32
    %47 = vector.broadcast %c1_i32 : i32 to vector<2x128xi32>
    %48 = arith.cmpi eq, %41, %47 : vector<2x128xi32>
    %49 = vector.broadcast %1 : i32 to vector<2x128xi32>
    %50 = arith.cmpi sge, %40, %49 : vector<2x128xi32>
    %51 = arith.andi %48, %50 : vector<2x128xi1>
    %52 = vector.broadcast %3 : i32 to vector<2x128xi32>
    %53 = arith.cmpi slt, %40, %52 : vector<2x128xi32>
    %54 = arith.andi %51, %53 : vector<2x128xi1>
    %55 = arith.ori %46, %54 : vector<2x128xi1>
    %cst_14 = arith.constant 1.000000e+00 : f32
    %cst_15 = arith.constant 0.000000e+00 : f32
    %56 = vector.broadcast %cst_14 : f32 to vector<2x128xf32>
    %57 = vector.broadcast %cst_15 : f32 to vector<2x128xf32>
    %58 = arith.select %55, %56, %57 : vector<2x128xi1>, vector<2x128xf32>
    %59 = tpu.iota {dimensions = array<i32: 0>} : vector<128x2xi32>
    %60 = tpu.iota {dimensions = array<i32: 1>} : vector<128x2xi32>
    %c0_i32_16 = arith.constant 0 : i32
    %61 = vector.broadcast %c0_i32_16 : i32 to vector<128x2xi32>
    %62 = arith.cmpi eq, %60, %61 : vector<128x2xi32>
    %63 = vector.broadcast %1 : i32 to vector<128x2xi32>
    %64 = arith.cmpi slt, %59, %63 : vector<128x2xi32>
    %65 = arith.andi %62, %64 : vector<128x2xi1>
    %c1_i32_17 = arith.constant 1 : i32
    %66 = vector.broadcast %c1_i32_17 : i32 to vector<128x2xi32>
    %67 = arith.cmpi eq, %60, %66 : vector<128x2xi32>
    %68 = vector.broadcast %1 : i32 to vector<128x2xi32>
    %69 = arith.cmpi sge, %59, %68 : vector<128x2xi32>
    %70 = arith.andi %67, %69 : vector<128x2xi1>
    %71 = vector.broadcast %3 : i32 to vector<128x2xi32>
    %72 = arith.cmpi slt, %59, %71 : vector<128x2xi32>
    %73 = arith.andi %70, %72 : vector<128x2xi1>
    %74 = arith.ori %65, %73 : vector<128x2xi1>
    %cst_18 = arith.constant 1.000000e+00 : f32
    %cst_19 = arith.constant 0.000000e+00 : f32
    %75 = vector.broadcast %cst_18 : f32 to vector<128x2xf32>
    %76 = vector.broadcast %cst_19 : f32 to vector<128x2xf32>
    %77 = arith.select %74, %75, %76 : vector<128x2xi1>, vector<128x2xf32>
    %c0_i32_20 = arith.constant 0 : i32
    %78 = arith.cmpi eq, %arg1, %c0_i32_20 : i32
    %79 = arith.extui %78 : i1 to i32
    %c0_i32_21 = arith.constant 0 : i32
    %80 = arith.cmpi ne, %79, %c0_i32_21 : i32
    scf.if %80 {
      %cst_54 = arith.constant 0.000000e+00 : f32
      %111 = vector.broadcast %cst_54 : f32 to vector<3x2x2xf32>
      %c0_55 = arith.constant 0 : index
      %c0_56 = arith.constant 0 : index
      %c0_57 = arith.constant 0 : index
      %c0_58 = arith.constant 0 : index
      %112 = vector.load %arg6[%c0_55, %c0_56, %c0_57, %c0_58] : memref<1x3x2x2xf32, #tpu.memory_space<vmem>>, vector<1x3x2x2xf32>
      %113 = vector.shape_cast %112 : vector<1x3x2x2xf32> to vector<3x2x2xf32>
      %114 = vector.shape_cast %111 : vector<3x2x2xf32> to vector<1x3x2x2xf32>
      tpu.vector_store %arg6[%c0_55, %c0_56, %c0_57, %c0_58], %114 {strides = array<i32>} : memref<1x3x2x2xf32, #tpu.memory_space<vmem>>, vector<1x3x2x2xf32>,
    } else {
    }
    %c0_22 = arith.constant 0 : index
    %c0_23 = arith.constant 0 : index
    %c0_24 = arith.constant 0 : index
    %c0_25 = arith.constant 0 : index
    %81 = vector.load %arg6[%c0_22, %c0_23, %c0_24, %c0_25] : memref<1x3x2x2xf32, #tpu.memory_space<vmem>>, vector<1x1x2x2xf32>
    %82 = vector.shape_cast %81 : vector<1x1x2x2xf32> to vector<2x2xf32>
    %cst_26 = arith.constant 0.000000e+00 : f32
    %83 = vector.broadcast %cst_26 : f32 to vector<128x128xf32>
    %84 = arith.select %37, %21, %83 : vector<128x128xi1>, vector<128x128xf32>
    %cst_27 = arith.constant dense<0.000000e+00> : vector<2x128xf32>
    %85 = tpu.matmul %58, %84, %cst_27 {dimension_numbers = #tpu.dot_dimension_numbers<[1], [0], [0], [1], [0, 0, 1, 1], [], []>} : vector<2x128xf32>, vector<128x128xf32>, vector<2x128xf32> -> vector<2x128xf32>
    %cst_28 = arith.constant dense<0.000000e+00> : vector<2x2xf32>
    %86 = tpu.matmul %85, %77, %cst_28 {dimension_numbers = #tpu.dot_dimension_numbers<[1], [0], [0], [1], [0, 0, 1, 1], [], []>} : vector<2x128xf32>, vector<128x2xf32>, vector<2x2xf32> -> vector<2x2xf32>
    %87 = arith.addf %82, %86 : vector<2x2xf32>
    %c0_29 = arith.constant 0 : index
    %c0_30 = arith.constant 0 : index
    %c0_31 = arith.constant 0 : index
    %c0_32 = arith.constant 0 : index
    %88 = vector.load %arg6[%c0_29, %c0_30, %c0_31, %c0_32] : memref<1x3x2x2xf32, #tpu.memory_space<vmem>>, vector<1x1x2x2xf32>
    %89 = vector.shape_cast %88 : vector<1x1x2x2xf32> to vector<2x2xf32>
    %90 = vector.shape_cast %87 : vector<2x2xf32> to vector<1x1x2x2xf32>
    tpu.vector_store %arg6[%c0_29, %c0_30, %c0_31, %c0_32], %90 {strides = array<i32>} : memref<1x3x2x2xf32, #tpu.memory_space<vmem>>, vector<1x1x2x2xf32>,
    %c0_33 = arith.constant 0 : index
    %c1_34 = arith.constant 1 : index
    %c0_35 = arith.constant 0 : index
    %c0_36 = arith.constant 0 : index
    %91 = vector.load %arg6[%c0_33, %c1_34, %c0_35, %c0_36] : memref<1x3x2x2xf32, #tpu.memory_space<vmem>>, vector<1x1x2x2xf32>
    %92 = vector.shape_cast %91 : vector<1x1x2x2xf32> to vector<2x2xf32>
    %cst_37 = arith.constant 0.000000e+00 : f32
    %93 = vector.broadcast %cst_37 : f32 to vector<128x128xf32>
    %94 = arith.select %37, %22, %93 : vector<128x128xi1>, vector<128x128xf32>
    %cst_38 = arith.constant dense<0.000000e+00> : vector<2x128xf32>
    %95 = tpu.matmul %58, %94, %cst_38 {dimension_numbers = #tpu.dot_dimension_numbers<[1], [0], [0], [1], [0, 0, 1, 1], [], []>} : vector<2x128xf32>, vector<128x128xf32>, vector<2x128xf32> -> vector<2x128xf32>
    %cst_39 = arith.constant dense<0.000000e+00> : vector<2x2xf32>
    %96 = tpu.matmul %95, %77, %cst_39 {dimension_numbers = #tpu.dot_dimension_numbers<[1], [0], [0], [1], [0, 0, 1, 1], [], []>} : vector<2x128xf32>, vector<128x2xf32>, vector<2x2xf32> -> vector<2x2xf32>
    %97 = arith.addf %92, %96 : vector<2x2xf32>
    %c0_40 = arith.constant 0 : index
    %c1_41 = arith.constant 1 : index
    %c0_42 = arith.constant 0 : index
    %c0_43 = arith.constant 0 : index
    %98 = vector.load %arg6[%c0_40, %c1_41, %c0_42, %c0_43] : memref<1x3x2x2xf32, #tpu.memory_space<vmem>>, vector<1x1x2x2xf32>
    %99 = vector.shape_cast %98 : vector<1x1x2x2xf32> to vector<2x2xf32>
    %100 = vector.shape_cast %97 : vector<2x2xf32> to vector<1x1x2x2xf32>
    tpu.vector_store %arg6[%c0_40, %c1_41, %c0_42, %c0_43], %100 {strides = array<i32>} : memref<1x3x2x2xf32, #tpu.memory_space<vmem>>, vector<1x1x2x2xf32>,
    %c0_44 = arith.constant 0 : index
    %c2 = arith.constant 2 : index
    %c0_45 = arith.constant 0 : index
    %c0_46 = arith.constant 0 : index
    %101 = vector.load %arg6[%c0_44, %c2, %c0_45, %c0_46] : memref<1x3x2x2xf32, #tpu.memory_space<vmem>>, vector<1x1x2x2xf32>
    %102 = vector.shape_cast %101 : vector<1x1x2x2xf32> to vector<2x2xf32>
    %cst_47 = arith.constant 0.000000e+00 : f32
    %103 = vector.broadcast %cst_47 : f32 to vector<128x128xf32>
    %104 = arith.select %36, %22, %103 : vector<128x128xi1>, vector<128x128xf32>
    %cst_48 = arith.constant dense<0.000000e+00> : vector<2x128xf32>
    %105 = tpu.matmul %58, %104, %cst_48 {dimension_numbers = #tpu.dot_dimension_numbers<[1], [0], [0], [1], [0, 0, 1, 1], [], []>} : vector<2x128xf32>, vector<128x128xf32>, vector<2x128xf32> -> vector<2x128xf32>
    %cst_49 = arith.constant dense<0.000000e+00> : vector<2x2xf32>
    %106 = tpu.matmul %105, %77, %cst_49 {dimension_numbers = #tpu.dot_dimension_numbers<[1], [0], [0], [1], [0, 0, 1, 1], [], []>} : vector<2x128xf32>, vector<128x2xf32>, vector<2x2xf32> -> vector<2x2xf32>
    %107 = arith.addf %102, %106 : vector<2x2xf32>
    %c0_50 = arith.constant 0 : index
    %c2_51 = arith.constant 2 : index
    %c0_52 = arith.constant 0 : index
    %c0_53 = arith.constant 0 : index
    %108 = vector.load %arg6[%c0_50, %c2_51, %c0_52, %c0_53] : memref<1x3x2x2xf32, #tpu.memory_space<vmem>>, vector<1x1x2x2xf32>
    %109 = vector.shape_cast %108 : vector<1x1x2x2xf32> to vector<2x2xf32>
    %110 = vector.shape_cast %107 : vector<2x2xf32> to vector<1x1x2x2xf32>
    tpu.vector_store %arg6[%c0_50, %c2_51, %c0_52, %c0_53], %110 {strides = array<i32>} : memref<1x3x2x2xf32, #tpu.memory_space<vmem>>, vector<1x1x2x2xf32>,
    return
  }
  func.func @transform_0(%arg0: i32, %arg1: i32, %arg2: memref<4x2xi32, #tpu.memory_space<smem>>) -> (i32, i32, i32) {
    %c0_i32 = arith.constant 0 : i32
    %c0_i32_0 = arith.constant 0 : i32
    %c0_i32_1 = arith.constant 0 : i32
    return %arg0, %c0_i32, %c0_i32_0 : i32, i32, i32
  }
  func.func @transform_1(%arg0: i32, %arg1: i32, %arg2: memref<4x2xi32, #tpu.memory_space<smem>>) -> (i32, i32, i32) {
    %c0_i32 = arith.constant 0 : i32
    %c0_i32_0 = arith.constant 0 : i32
    return %arg0, %arg1, %c0_i32 : i32, i32, i32
  }
  func.func @transform_2(%arg0: i32, %arg1: i32, %arg2: memref<4x2xi32, #tpu.memory_space<smem>>) -> (i32, i32, i32) {
    %c0_i32 = arith.constant 0 : i32
    %c0_i32_0 = arith.constant 0 : i32
    %c0_i32_1 = arith.constant 0 : i32
    return %arg0, %c0_i32, %c0_i32_0 : i32, i32, i32
  }
  func.func @transform_3(%arg0: i32, %arg1: i32, %arg2: memref<4x2xi32, #tpu.memory_space<smem>>) -> (i32, i32, i32, i32) {
    %c0_i32 = arith.constant 0 : i32
    %c0_i32_0 = arith.constant 0 : i32
    %c0_i32_1 = arith.constant 0 : i32
    %c0_i32_2 = arith.constant 0 : i32
    return %arg0, %c0_i32, %c0_i32_0, %c0_i32_1 : i32, i32, i32, i32
  }
}

</mosaic_0001>

<bundles_post_ra>
// kernel: tpu_custom_call.1
= control target key start
LH: loop header
LB: loop body
LE: loop exit
PB: predicated region body
PF: predicated region fallthrough
CT: control target
= control target key end

     0   :  { %s4067_s0 = inlined_call_operand.vmem [shape: s32[4,2], index: 0, kind: input, shape index: {}]   ;;  %s4068_s1 = inlined_call_operand.vmem [shape: f32[4,128,128], index: 1, kind: input, shape index: {}]   ;;  %s4069_s2 = inlined_call_operand.vmem [shape: s32[4,128,1], index: 2, kind: input, shape index: {}]   ;;  %s4070_s3 = inlined_call_operand.vmem [shape: s32[4,1,128], index: 3, kind: input, shape index: {}]   ;;  %s4071_s4 = inlined_call_operand.vmem [shape: f32[4,3,2,2], index: 4, kind: output, shape index: {}]  }
   0x1   :  { %s9_s17 = sshll.u32 %s4067_s0, 4  ;;  %s10_s17 = int_to_ptr.vmem [resolvable:$true] %s9_s17 }
   0x2   :  { %s2186_s18 = scalar_lea.vmem %s10_s17, 64  ;;  %p2191_p1 = scmp.lt.s32.totalorder %s10_s17, %s10_s17 }
   0x3   :  { %p2187_p0 = scmp.ne.s32.totalorder %s10_s17, %s2186_s18  ;;  %p2192_p2 = scmp.lt.s32.totalorder %s2186_s18, %s2186_s18 }
   0x5   :  { %p2193_p3 = por %p2192_p2, %p2191_p1 }
   0x7   :  { %p2194_p4 = pnand %p2193_p3, %p2187_p0 }
   0x9   :  { %2197 = shalt.err (!%p2194_p4)  }
   0xa   :  { %s2224_s19 = smov [#allocation3]  }
   0xb   :  { %12 = dma.vmem_to_smem %s10_s17, 64, %s2224_s19, [#allocation2] }
   0xc   :  { %2210 = dma.done.wait [#allocation2], 64 }
   0xd   :  { %2211 = vsyncadd [#allocation2], 4294967232 }
   0xe   :  { %14 = sfence }
   0xf   :  { %s2257_s20 = smov 0   ;;  %s2259_s21 = smov 0  }
  0x10   :  { %s2261_s22 = smov 0  }
  0x11 LB: > { %s32_s0 = sadd.s32 1, %s2218_s21  ;;  %p1575_p5 = scmp.ge.s32.totalorder %s2222_s22, 1  ;;  %s2222_s22 = sphi %s2261_s22, %s20_s22   ;;  %s2218_s21 = sphi %s2259_s21, %s4538_s21   ;;  %s2214_s20 = sphi %s2257_s20, %s4537_s20  }
  0x12   : > { %p34_p6 = scmp.ge.s32.totalorder %s32_s0, 4  ;;  %p181_p7 = scmp.lt.s32.totalorder %s2222_s22, 5 }
  0x14   : > { %s4540_s0 = smov (%p34_p6, %s32_s0), 0  ;;  %p182_p8 = pnand %p1575_p5, %p181_p7 }
  0x16   : > { %185 = sbr.rel (%p182_p8) target bundleno = 861 (0x35d), region = 32 }
  0x1b   : > { %p217_p9 = scmp.lt.s32.totalorder %s2214_s20, 3  ;;  %v2225_v0 = vmov 0   ;;  %v4072_v33 = vmov 0.0   ;;  %vm4110_vm0 = vmmov 0   ;;  %s1581_s5 = sshll.u32 %s2214_s20, 7 }
  0x1c   : > { %2120 = vset.pattern.permute.xlu0 %v2225_v0  ;;  %2121 = vset.pattern.permute.xlu1 %v2225_v0  ;;  %s242_s6 = sadd.s32 1, %s1581_s5  ;;  %s2414_s7 = sld [smem:[#allocation3 + %s1581_s5]] }
  0x1d   : > { %s2279_s23 = scalar_select %p217_p9, %s2214_s20, 3  ;;  %1880 = vmatprep.subr.mxu1 %v4072_v33  ;;  %1912 = vmatprep.mubr.msk.f32.mxu1 %vm4110_vm0, %v4072_v33 }
  0x1e   : > { %s2418_s8 = sld [smem:[#allocation3 + %s242_s6]] }
  0x1f   : > { %s1688_s24 = sshll.u32 %s2279_s23, 7  ;;  %s234_s11 = scalar_lea.vmem %s4070_s3, %s2279_s23 }
  0x20   : > { %s2285_s27 = scalar_lea.vmem %s4068_s1, %s1688_s24  ;;  %s2298_s30 = scalar_lea.vmem %s4069_s2, %s1688_s24 }
  0x21   : > { %v2288_v1 = vld [vmem:[%s2285_s27 + $0x78] sm:$0xff]  ;;  %v2291_v2 = vld [vmem:[%s2285_s27 + $0x70] sm:$0xff]  ;;  %v2302_v3 = vld [vmem:[%s2285_s27 + $0x68] sm:$0xff]  ;;  %s2090_s12 = smul.u32 6, %s2279_s23 }
  0x22   : > { %1824 = vmatprep.subr.mxu0 %v2288_v1  ;;  %v2305_v4 = vld [vmem:[%s2285_s27] sm:$0xff]  ;;  %v710_v5 = vld [vmem:[%s2298_s30 + $0x78] sm:$0xff]  ;;  %v708_v6 = vld [vmem:[%s2298_s30 + $0x68] sm:$0xff] }
  0x23   : > { %1825 = vmatpush3.xpose.msra.mxu0 %v2288_v1  ;;  %1856 = vmatprep.mubr.f32.mxu0 %v2305_v4  ;;  %v2313_v7 = vld [vmem:[%s2285_s27 + $0x60] sm:$0xff]  ;;  %v709_v8 = vld [vmem:[%s2298_s30 + $0x70] sm:$0xff]  ;;  %v2320_v10 = vld [vmem:[%s2285_s27 + $0x58] sm:$0xff]  ;;  %s3907_s15 = scalar_lea.vmem %s4071_s4, %s2090_s12 }
  0x24   : > { %1826 = vmatprep.subr.mxu0 %v2291_v2  ;;  %758 = vperm.xlu0 %2120, %v710_v5   ;;  %v707_v9 = vld [vmem:[%s2298_s30 + $0x60] sm:$0xff]  ;;  %v706_v11 = vld [vmem:[%s2298_s30 + $0x58] sm:$0xff]  ;;  %v705_v12 = vld [vmem:[%s2298_s30 + $0x50] sm:$0xff] }
  0x25   : > { %752 = vperm.xlu1 %2121, %v708_v6   ;;  %v272_v13 = vld [vmem:[%s2285_s27 + $0x50] sm:$0xff]  ;;  %v704_v14 = vld [vmem:[%s2298_s30 + $0x48] sm:$0xff]  ;;  %v703_v15 = vld [vmem:[%s2298_s30 + $0x40] sm:$0xff]  ;;  %v780_v6 = vlaneseq }
  0x26   : > { %v271_v16 = vld [vmem:[%s2285_s27 + $0x48] sm:$0xff]  ;;  %v702_v17 = vld [vmem:[%s2298_s30 + $0x38] sm:$0xff]  ;;  %v701_v18 = vld [vmem:[%s2298_s30 + $0x30] sm:$0xff] }
  0x27   : > { %1827 = vmatpush3.xpose.msra.mxu0 %v2291_v2  ;;  %v270_v19 = vld [vmem:[%s2285_s27 + $0x40] sm:$0xff]  ;;  %v700_v20 = vld [vmem:[%s2298_s30 + $0x28] sm:$0xff]  ;;  %v269_v22 = vld [vmem:[%s2285_s27 + $0x38] sm:$0xff] }
  0x28   : > { %1828 = vmatprep.subr.mxu0 %v2302_v3  ;;  %755 = vperm.xlu0 %2120, %v709_v8   ;;  %v699_v21 = vld [vmem:[%s2298_s30 + $0x20] sm:$0xff]  ;;  %v698_v23 = vld [vmem:[%s2298_s30 + $0x18] sm:$0xff]  ;;  %v697_v24 = vld [vmem:[%s2298_s30 + $0x10] sm:$0xff] }
  0x29   : > { %749 = vperm.xlu1 %2121, %v707_v9   ;;  %v268_v25 = vld [vmem:[%s2285_s27 + $0x30] sm:$0xff]  ;;  %v696_v26 = vld [vmem:[%s2298_s30 + $0x8] sm:$0xff]  ;;  %v695_v27 = vld [vmem:[%s2298_s30] sm:$0xff] }
  0x2a   : > { %v267_v28 = vld [vmem:[%s2285_s27 + $0x28] sm:$0xff]  ;;  %v266_v29 = vld [vmem:[%s2285_s27 + $0x20] sm:$0xff]  ;;  %v265_v30 = vld [vmem:[%s2285_s27 + $0x18] sm:$0xff] }
  0x2b   : > { %1829 = vmatpush3.xpose.msra.mxu0 %v2302_v3  ;;  %v264_v31 = vld [vmem:[%s2285_s27 + $0x10] sm:$0xff]  ;;  %v263_v32 = vld [vmem:[%s2285_s27 + $0x8] sm:$0xff] }
  0x2c   : > { %1830 = vmatprep.subr.mxu0 %v2313_v7  ;;  %746 = vperm.xlu0 %2120, %v706_v11  }
  0x2d   : > { %743 = vperm.xlu1 %2121, %v705_v12  }
  0x2f   : > { %1831 = vmatpush3.xpose.msra.mxu0 %v2313_v7 }
  0x30   : > { %1832 = vmatprep.subr.mxu0 %v2320_v10  ;;  %740 = vperm.xlu0 %2120, %v704_v14  }
  0x31   : > { %737 = vperm.xlu1 %2121, %v703_v15  }
  0x33   : > { %1833 = vmatpush3.xpose.msra.mxu0 %v2320_v10 }
  0x34   : > { %1834 = vmatprep.subr.mxu0 %v272_v13  ;;  %734 = vperm.xlu0 %2120, %v702_v17  }
  0x35   : > { %731 = vperm.xlu1 %2121, %v701_v18  }
  0x37   : > { %1835 = vmatpush3.xpose.msra.mxu0 %v272_v13 }
  0x38   : > { %1836 = vmatprep.subr.mxu0 %v271_v16  ;;  %728 = vperm.xlu0 %2120, %v700_v20  }
  0x39   : > { %725 = vperm.xlu1 %2121, %v699_v21   ;;  %v2405_v21 = vshrl.u32 %v780_v6, 7 }
  0x3b   : > { %1837 = vmatpush3.xpose.msra.mxu0 %v271_v16 }
  0x3c   : > { %1838 = vmatprep.subr.mxu0 %v270_v19  ;;  %722 = vperm.xlu0 %2120, %v698_v23  }
  0x3d   : > { %719 = vperm.xlu1 %2121, %v697_v24  }
  0x3f   : > { %1839 = vmatpush3.xpose.msra.mxu0 %v270_v19 }
  0x40   : > { %1840 = vmatprep.subr.mxu0 %v269_v22  ;;  %716 = vperm.xlu0 %2120, %v696_v26  }
  0x41   : > { %713 = vperm.xlu1 %2121, %v695_v27  }
  0x43   : > { %1841 = vmatpush3.xpose.msra.mxu0 %v269_v22 }
  0x44   : > { %1842 = vmatprep.subr.mxu0 %v268_v25 }
  0x47   : > { %1843 = vmatpush3.xpose.msra.mxu0 %v268_v25 }
  0x48   : > { %1844 = vmatprep.subr.mxu0 %v267_v28 }
  0x4b   : > { %1845 = vmatpush3.xpose.msra.mxu0 %v267_v28 }
  0x4c   : > { %1846 = vmatprep.subr.mxu0 %v266_v29 }
  0x4f   : > { %1847 = vmatpush3.xpose.msra.mxu0 %v266_v29 }
  0x50   : > { %1848 = vmatprep.subr.mxu0 %v265_v30 }
  0x53   : > { %1849 = vmatpush3.xpose.msra.mxu0 %v265_v30 }
  0x54   : > { %1850 = vmatprep.subr.mxu0 %v264_v31 }
  0x57   : > { %1851 = vmatpush3.xpose.msra.mxu0 %v264_v31 }
  0x58   : > { %1852 = vmatprep.subr.mxu0 %v263_v32 }
  0x5b   : > { %1853 = vmatpush3.xpose.msra.mxu0 %v263_v32 }
  0x5c   : > { %1854 = vmatprep.subr.mxu0 %v2305_v4 }
  0x5f   : > { %1855 = vmatpush3.xpose.msra.mxu0 %v2305_v4 }
  0x60   : > { %1950 = vmatprep.subr.mxu0 %v4072_v33 }
  0x62   : > { %1857 = vmatmul.mubr.f32.vlgmr.msra.gmra.mxu0 %v263_v32 }
  0x63   : > { %1859 = vmatprep.mubr.f32.mxu0 %v264_v31 }
  0x66   : > { %1860 = vmatmul.mubr.f32.gmra.mxu0 %v265_v30  ;;  %v2412_v30 = vadd.s32 120, %v2405_v21 }
  0x67   : > { %1862 = vmatprep.mubr.f32.mxu0 %v266_v29 }
  0x6a   : > { %1863 = vmatmul.mubr.f32.gmra.mxu0 %v267_v28 }
  0x6b   : > { %1865 = vmatprep.mubr.f32.mxu0 %v268_v25 }
  0x6e   : > { %1866 = vmatmul.mubr.f32.gmra.mxu0 %v269_v22 }
  0x6f   : > { %1868 = vmatprep.mubr.f32.mxu0 %v270_v19 }
  0x72   : > { %1869 = vmatmul.mubr.f32.gmra.mxu0 %v271_v16 }
  0x73   : > { %1871 = vmatprep.mubr.f32.mxu0 %v272_v13 }
  0x76   : > { %1872 = vmatmul.mubr.f32.gmra.mxu0 %v2320_v10 }
  0x77   : > { %1874 = vmatprep.mubr.f32.mxu0 %v2313_v7 }
  0x7a   : > { %1875 = vmatmul.mubr.f32.gmra.mxu0 %v2302_v3 }
  0x7b   : > { %1877 = vmatprep.mubr.f32.mxu0 %v2291_v2 }
  0x7e   : > { %1878 = vmatmul.mubr.f32.gmra.mxu0 %v2288_v1 }
  0x7f   : > { %1982 = vmatprep.mubr.msk.f32.mxu0 %vm4110_vm0, %v4072_v33 }
 0x122   : > { %v2360_v34 = vpop.f32.mrf.mxu0 }
 0x123   : > { %4135 = vst [vmem:[#allocation5_spill] sm:$0xff] %v2360_v34  ;;  %v424_v45 = vand.u32 2147483647, %v2360_v34 }
 0x124   : > { %v2362_v35 = vpop.f32.mrf.mxu0 }
 0x125   : > { %4136 = vst [vmem:[#allocation6_spill] sm:$0xff] %v2362_v35  ;;  %v423_v46 = vand.u32 2147483647, %v2362_v35  ;;  %v440_v50 = vsub.f32 0.0, %v424_v45  ;;  %v2416_v45 = vand.u32 127, %v780_v6  ;;  %v2463_v6 = vadd.s32 48, %v2405_v21 }
 0x126   : > { %v2364_v36 = vpop.f32.mrf.mxu0 }
 0x127   : > { %4137 = vst [vmem:[#allocation7_spill] sm:$0xff] %v2364_v36  ;;  %v426_v48 = vand.u32 2147483647, %v2364_v36  ;;  %v439_v52 = vsub.f32 0.0, %v423_v46  ;;  %v457_v58 = vmul.f32 1.442695, %v440_v50  ;;  %vm4113_vm1 = vcmp.ne.s32.totalorder %v2412_v30, %v2416_v45 }
 0x128   : > { %v2366_v37 = vpop.f32.mrf.mxu0  ;;  %vm4120_vm15 = vcmp.eq.s32.totalorder %v2416_v45, 1 }
 0x129   : > { %4138 = vst [vmem:[#allocation8_spill] sm:$0xff] %v2366_v37  ;;  %v425_v49 = vand.u32 2147483647, %v2366_v37  ;;  %v442_v54 = vsub.f32 0.0, %v426_v48  ;;  %v455_v61 = vmul.f32 1.442695, %v439_v52  ;;  %2122 = vpow2.f32 %v457_v58 }
 0x12a   : > { %v2368_v38 = vpop.f32.mrf.mxu0  ;;  %v2426_v52 = vadd.s32 88, %v2405_v21 }
 0x12b   : > { %4139 = vst [vmem:[#allocation9_spill] sm:$0xff] %v2368_v38  ;;  %v428_v51 = vand.u32 2147483647, %v2368_v38  ;;  %v441_v56 = vsub.f32 0.0, %v425_v49  ;;  %v461_v0 = vmul.f32 1.442695, %v442_v54  ;;  %2124 = vpow2.f32 %v455_v61  ;;  %v2445_v61 = vpop.permute.xlu1 %752 }
 0x12c   : > { %v2370_v39 = vpop.f32.mrf.mxu0  ;;  %v2421_v49 = vadd.s32 112, %v2405_v21  ;;  %v2429_v54 = vadd.s32 72, %v2405_v21  ;;  %4150 = vst [vmem:[#allocation20_spill] sm:$0xff] %v2445_v61  ;;  %vm4115_vm5 = vcmp.ne.s32.totalorder %v2426_v52, %v2416_v45 }
 0x12d   : > { %4140 = vst [vmem:[#allocation10_spill] sm:$0xff] %v2370_v39  ;;  %v427_v55 = vand.u32 2147483647, %v2370_v39  ;;  %v444_v59 = vsub.f32 0.0, %v428_v51  ;;  %v459_v3 = vmul.f32 1.442695, %v441_v56  ;;  %2126 = vpow2.f32 %v461_v0  ;;  %v2423_v51 = vpop.permute.xlu0 %758 }
 0x12e   : > { %v2372_v40 = vpop.f32.mrf.mxu0  ;;  %v2435_v56 = vadd.s32 40, %v2405_v21  ;;  %vm4114_vm3 = vcmp.ne.s32.totalorder %v2421_v49, %v2416_v45  ;;  %vm4117_vm10 = vcmp.ne.s32.totalorder %v2429_v54, %v2416_v45 }
 0x12f   : > { %4141 = vst [vmem:[#allocation11_spill] sm:$0xff] %v2372_v40  ;;  %v430_v57 = vand.u32 2147483647, %v2372_v40  ;;  %v443_v1 = vsub.f32 0.0, %v427_v55  ;;  %v465_v7 = vmul.f32 1.442695, %v444_v59  ;;  %2128 = vpow2.f32 %v459_v3 }
 0x130   : > { %v2374_v41 = vpop.f32.mrf.mxu0  ;;  %v2432_v55 = vadd.s32 56, %v2405_v21  ;;  %v2457_v3 = vadd.s32 64, %v2405_v21 }
 0x131   : > { %4142 = vst [vmem:[#allocation12_spill] sm:$0xff] %v2374_v41  ;;  %v429_v62 = vand.u32 2147483647, %v2374_v41  ;;  %v446_v4 = vsub.f32 0.0, %v430_v57  ;;  %v463_v13 = vmul.f32 1.442695, %v443_v1  ;;  %2130 = vpow2.f32 %v465_v7 }
 0x132   : > { %v2376_v42 = vpop.f32.mrf.mxu0  ;;  %v2438_v57 = vadd.s32 24, %v2405_v21  ;;  %v634_v1 = vsub.f32 0.0, %v2364_v36  ;;  %v2466_v7 = vadd.s32 32, %v2405_v21 }
 0x133   : > { %4143 = vst [vmem:[#allocation13_spill] sm:$0xff] %v2376_v42  ;;  %v432_v8 = vand.u32 2147483647, %v2376_v42  ;;  %v445_v10 = vsub.f32 0.0, %v429_v62  ;;  %v469_v16 = vmul.f32 1.442695, %v446_v4 }
 0x134   : > { %v2378_v43 = vpop.f32.mrf.mxu0  ;;  %4148 = vst [vmem:[#allocation18_spill] sm:$0xff] %v2438_v57  ;;  %v2448_v62 = vadd.s32 96, %v2405_v21 }
 0x135   : > { %4144 = vst [vmem:[#allocation14_spill] sm:$0xff] %v2378_v43  ;;  %v431_v14 = vand.u32 2147483647, %v2378_v43  ;;  %v448_v19 = vsub.f32 0.0, %v432_v8  ;;  %v467_v22 = vmul.f32 1.442695, %v445_v10 }
 0x136   : > { %v2380_v44 = vpop.f32.mrf.mxu0  ;;  %v2440_v58 = vpop.eup %2122  ;;  %4151 = vst [vmem:[#allocation21_spill] sm:$0xff] %v2448_v62  ;;  %v636_v10 = vsub.f32 0.0, %v2368_v38 }
 0x137   : > { %4145 = vst [vmem:[#allocation15_spill] sm:$0xff] %v2380_v44  ;;  %v434_v60 = vand.u32 2147483647, %v2380_v44  ;;  %v447_v24 = vsub.f32 0.0, %v431_v14  ;;  %v473_v28 = vmul.f32 1.442695, %v448_v19  ;;  %v2488_v19 = vstv %s2418_s8 }
 0x138   : > { %v2384_v47 = vpop.f32.mrf.mxu0  ;;  %4149 = vst [vmem:[#allocation19_spill] sm:$0xff] %v2440_v58  ;;  %v2450_v0 = vpop.eup %2124 }
 0x139   : > { %4146 = vst [vmem:[#allocation16_spill] sm:$0xff] %v2384_v47  ;;  %v433_v2 = vand.u32 2147483647, %v2384_v47  ;;  %v450_v9 = vsub.f32 0.0, %v434_v60  ;;  %v471_v46 = vmul.f32 1.442695, %v447_v24 }
 0x13a   : > { %v2389_v53 = vpop.f32.mrf.mxu0  ;;  %v2443_v60 = vadd.s32 104, %v2405_v21  ;;  %4152 = vst [vmem:[#allocation22_spill] sm:$0xff] %v2450_v0  ;;  %v2459_v4 = vpop.eup %2126  ;;  %v490_v36 = vmul.f32 -0.5, %v2450_v0 }
 0x13b   : > { %4147 = vst [vmem:[#allocation17_spill] sm:$0xff] %v2389_v53  ;;  %v436_v5 = vand.u32 2147483647, %v2389_v53  ;;  %v449_v15 = vsub.f32 0.0, %v433_v2  ;;  %v477_v20 = vmul.f32 1.442695, %v450_v9 }
 0x13c   : > { %v2395_v63 = vpop.f32.mrf.mxu0  ;;  %v2454_v2 = vadd.s32 80, %v2405_v21  ;;  %4153 = vst [vmem:[#allocation23_spill] sm:$0xff] %v2459_v4  ;;  %v2468_v8 = vpop.eup %2128  ;;  %v496_v9 = vadd.f32 1.0, %v2440_v58  ;;  %v514_v24 = vadd.f32 1.0, %v2459_v4  ;;  %vm4116_vm8 = vcmp.ne.s32.totalorder %v2443_v60, %v2416_v45 }
 0x13d   : > { %v452_v11 = vsub.f32 0.0, %v436_v5  ;;  %v435_v18 = vand.u32 2147483647, %v2395_v63  ;;  %v475_v25 = vmul.f32 1.442695, %v449_v15  ;;  %v633_v5 = vsub.f32 0.0, %v2366_v37 }
 0x13e   : > { %v2400_v12 = vpop.f32.mrf.mxu0  ;;  %4154 = vst [vmem:[#allocation24_spill] sm:$0xff] %v2468_v8  ;;  %v2478_v14 = vpop.eup %2130  ;;  %v639_v15 = vsub.f32 0.0, %v2378_v43 }
 0x13f   : > { %v481_v17 = vmul.f32 1.442695, %v452_v11  ;;  %v451_v26 = vsub.f32 0.0, %v435_v18  ;;  %v438_v27 = vand.u32 2147483647, %v2400_v12  ;;  %v2473_v11 = vadd.s32 16, %v2405_v21 }
 0x140   : > { %v2407_v23 = vpop.f32.mrf.mxu0  ;;  %v2485_v18 = vstv %s2414_s7 }
 0x141   : > { %2132 = vpow2.f32 %v481_v17  ;;  %v437_v29 = vand.u32 2147483647, %v2407_v23  ;;  %v479_v31 = vmul.f32 1.442695, %v451_v26  ;;  %v454_v32 = vsub.f32 0.0, %v438_v27  ;;  %4155 = vst [vmem:[#allocation25_spill] sm:$0xff] %v2473_v11  ;;  %v2482_v17 = vpop.permute.xlu0 %755 }
 0x142   : > { %2134 = vpow2.f32 %v463_v13  ;;  %v2476_v13 = vadd.s32 8, %v2405_v21  ;;  %v635_v26 = vsub.f32 0.0, %v2370_v39  ;;  %v517_v39 = vmul.f32 -0.5, %v2459_v4 }
 0x143   : > { %2136 = vpow2.f32 %v469_v16  ;;  %v453_v48 = vsub.f32 0.0, %v437_v29  ;;  %v485_v50 = vmul.f32 1.442695, %v454_v32  ;;  %v487_v16 = vadd.f32 1.0, %v2450_v0 }
 0x144   : > { %2138 = vpow2.f32 %v477_v20  ;;  %4156 = vst [vmem:[#allocation26_spill] sm:$0xff] %v2476_v13  ;;  %v2500_v29 = vmax.f32 %v633_v5, 0.0  ;;  %v637_v32 = vsub.f32 0.0, %v2374_v41  ;;  %v499_v5 = vmul.f32 -0.5, %v2440_v58 }
 0x145   : > { %2140 = vpow2.f32 %v467_v22  ;;  %v483_v59 = vmul.f32 1.442695, %v453_v48  ;;  %v2530_v34 = vpop.permute.xlu0 %746  ;;  %v642_v0 = vsub.f32 0.0, %v2380_v44 }
 0x146   : > { %2142 = vpow2.f32 %v475_v25  ;;  %v2494_v25 = vmax.f32 %v634_v1, 0.0  ;;  %4159 = vst [vmem:[#allocation29_spill] sm:$0xff] %v2500_v29  ;;  %v640_v1 = vsub.f32 0.0, %v2376_v42 }
 0x147   : > { %2144 = vpow2.f32 %v479_v31  ;;  %v638_v31 = vsub.f32 0.0, %v2372_v40 }
 0x148   : > { %2146 = vpow2.f32 %v473_v28  ;;  %4157 = vst [vmem:[#allocation27_spill] sm:$0xff] %v2494_v25  ;;  %v505_v28 = vadd.f32 1.0, %v2468_v8 }
 0x149   : > { %2148 = vpow2.f32 %v485_v50  ;;  %v532_v50 = vadd.f32 1.0, %v2478_v14  ;;  %v2526_v29 = vmax.f32 %v638_v31, 0.0 }
 0x14a   : > { %2150 = vpow2.f32 %v471_v46  ;;  %v2504_v46 = vpop.permute.xlu1 %749 }
 0x14b   : > { %2152 = vpow2.f32 %v483_v59  ;;  %4160 = vst [vmem:[#allocation30_spill] sm:$0xff] %v2504_v46  ;;  %v2509_v59 = vmax.f32 %v636_v10, 0.0  ;;  %v2521_v10 = vmax.f32 %v635_v26, 0.0  ;;  %4165 = vst [vmem:[#allocation35_spill] sm:$0xff] %v2526_v29  ;;  %v4215_v46 = vld [vmem:[#allocation16_spill] sm:$0xff] }
 0x14c   : > { %2154 = vlog2.f32 %v496_v9 }
 0x14d   : > { %4162 = vst [vmem:[#allocation32_spill] sm:$0xff] %v2509_v59  ;;  %2156 = vlog2.f32 %v487_v16  ;;  %4164 = vst [vmem:[#allocation34_spill] sm:$0xff] %v2521_v10  ;;  %v2528_v16 = vmax.f32 %v637_v32, 0.0  ;;  %v2540_v10 = vadd.f32 1.0, %v499_v5  ;;  %v2549_v59 = vadd.f32 1.0, %v490_v36 }
 0x14e   : > { %v2490_v20 = vpop.eup %2132  ;;  %2158 = vlog2.f32 %v514_v24  ;;  %v2535_v24 = vmax.f32 %v640_v1, 0.0  ;;  %v2545_v32 = vpop.permute.xlu1 %743  ;;  %v518_v5 = vadd.f32 1.0, %v517_v39  ;;  %v535_v36 = vmul.f32 -0.5, %v2478_v14 }
 0x14f   : > { %v2497_v27 = vpop.eup %2134  ;;  %v604_v33 = vadd.f32 1.0, %v2490_v20  ;;  %2160 = vlog2.f32 %v505_v28  ;;  %4166 = vst [vmem:[#allocation36_spill] sm:$0xff] %v2528_v16  ;;  %4168 = vst [vmem:[#allocation38_spill] sm:$0xff] %v2540_v10  ;;  %v2542_v28 = vmax.f32 %v639_v15, 0.0  ;;  %v2560_v10 = vmul.f32 -0.5, %v2468_v8 }
 0x150   : > { %4158 = vst [vmem:[#allocation28_spill] sm:$0xff] %v2497_v27  ;;  %v2506_v48 = vpop.eup %2136  ;;  %v523_v9 = vadd.f32 1.0, %v2497_v27  ;;  %2162 = vlog2.f32 %v532_v50  ;;  %4167 = vst [vmem:[#allocation37_spill] sm:$0xff] %v2535_v24  ;;  %v2586_v29 = vmul.f32 -0.5, %v2497_v27  ;;  %v2589_v8 = vld [vmem:[%s234_s11] ss:$0 sm:$0xff] }
 0x151   : > { %4161 = vst [vmem:[#allocation31_spill] sm:$0xff] %v2506_v48  ;;  %v2512_v22 = vpop.eup %2138  ;;  %4169 = vst [vmem:[#allocation39_spill] sm:$0xff] %v2542_v28  ;;  %2164 = vlog2.f32 %v604_v33  ;;  %vm779_vm2 = vcmp.eq.s32.totalorder %v2423_v51, %v2589_v8  ;;  %vm778_vm4 = vcmp.eq.s32.totalorder %v2482_v17, %v2589_v8  ;;  %vm775_vm6 = vcmp.eq.s32.totalorder %v2530_v34, %v2589_v8  ;;  %v4227_v17 = vld [vmem:[#allocation21_spill] sm:$0xff] }
 0x152   : > { %v2517_v37 = vpop.eup %2140  ;;  %v586_v26 = vadd.f32 1.0, %v2512_v22  ;;  %4170 = vst [vmem:[#allocation40_spill] sm:$0xff] %v2549_v59  ;;  %2166 = vlog2.f32 %v523_v9  ;;  %4171 = vst [vmem:[#allocation41_spill] sm:$0xff] %v2560_v10  ;;  %v550_v9 = vadd.f32 1.0, %v2506_v48  ;;  %v553_v59 = vmul.f32 -0.5, %v2506_v48  ;;  %v2581_v42 = vpop.permute.xlu1 %737 }
 0x153   : > { %4163 = vst [vmem:[#allocation33_spill] sm:$0xff] %v2517_v37  ;;  %v2523_v35 = vpop.eup %2142  ;;  %v541_v16 = vadd.f32 1.0, %v2517_v37  ;;  %v2583_v10 = vadd.f32 1.0, %v535_v36  ;;  %4175 = vst [vmem:[#allocation45_spill] sm:$0xff] %v2586_v29  ;;  %v544_v15 = vmul.f32 -0.5, %v2517_v37  ;;  %v645_v37 = vsub.f32 0.0, %v2407_v23 }
 0x154   : > { %v2532_v38 = vpop.eup %2144  ;;  %v577_v1 = vadd.f32 1.0, %v2523_v35  ;;  %v2599_v36 = vadd.f32 1.0, %v553_v59  ;;  %v580_v24 = vmul.f32 -0.5, %v2523_v35  ;;  %vm777_vm9 = vcmp.eq.s32.totalorder %v2445_v61, %v2589_v8  ;;  %vm2722_vm11 = vmand %vm779_vm2, %vm4113_vm1 }
 0x155   : > { %v2538_v41 = vpop.eup %2146  ;;  %v595_v31 = vadd.f32 1.0, %v2532_v38  ;;  %4174 = vst [vmem:[#allocation44_spill] sm:$0xff] %v2583_v10  ;;  %v2612_v59 = vadd.f32 1.0, %v544_v15  ;;  %v598_v27 = vmul.f32 -0.5, %v2532_v38  ;;  %v646_v15 = vsub.f32 0.0, %v2400_v12  ;;  %vm2753_vm1 = vmand %vm778_vm4, %vm4114_vm3 }
 0x156   : > { %v2547_v40 = vpop.eup %2148  ;;  %v568_v50 = vadd.f32 1.0, %v2538_v41  ;;  %4179 = vst [vmem:[#allocation49_spill] sm:$0xff] %v2599_v36  ;;  %v2627_v29 = vpop.permute.xlu1 %731  ;;  %v581_v47 = vadd.f32 1.0, %v580_v24  ;;  %v661_v61 = vmax.f32 %v645_v37, 0.0  ;;  %vm2783_vm4 = vmand %vm775_vm6, %vm4115_vm5 }
 0x157   : > { %v2553_v25 = vpop.eup %2150  ;;  %2168 = vlog2.f32 %v595_v31  ;;  %v622_v33 = vadd.f32 1.0, %v2547_v40  ;;  %v2571_v31 = vpop.permute.xlu0 %740  ;;  %4182 = vst [vmem:[#allocation52_spill] sm:$0xff] %v2612_v59  ;;  %v599_v57 = vadd.f32 1.0, %v598_v27 }
 0x158   : > { %v2557_v58 = vpop.eup %2152  ;;  %2170 = vlog2.f32 %v586_v26  ;;  %4172 = vst [vmem:[#allocation42_spill] sm:$0xff] %v2571_v31  ;;  %v559_v43 = vadd.f32 1.0, %v2553_v25  ;;  %v2577_v26 = vmul.f32 %v2459_v4, %v518_v5  ;;  %v571_v4 = vmul.f32 -0.5, %v2538_v41 }
 0x159   : > { %2172 = vlog2.f32 %v622_v33  ;;  %v613_v39 = vadd.f32 1.0, %v2557_v58  ;;  %v607_v5 = vmul.f32 -0.5, %v2490_v20 }
 0x15a   : > { %2174 = vlog2.f32 %v577_v1  ;;  %4173 = vst [vmem:[#allocation43_spill] sm:$0xff] %v2577_v26  ;;  %v2591_v1 = vpop.eup %2154  ;;  %v2629_v13 = vadd.f32 1.0, %v571_v4  ;;  %v2675_v37 = vpop.permute.xlu1 %725 }
 0x15b   : > { %2176 = vlog2.f32 %v613_v39  ;;  %4176 = vst [vmem:[#allocation46_spill] sm:$0xff] %v2591_v1  ;;  %v2595_v39 = vmax.f32 %v642_v0, 0.0  ;;  %v2597_v26 = vpop.eup %2156  ;;  %v2608_v0 = vpop.permute.xlu0 %734 }
 0x15c   : > { %2178 = vlog2.f32 %v550_v9  ;;  %4178 = vst [vmem:[#allocation48_spill] sm:$0xff] %v2597_v26  ;;  %v562_v9 = vmul.f32 -0.5, %v2553_v25  ;;  %v2603_v28 = vpop.eup %2158  ;;  %v589_v26 = vmul.f32 -0.5, %v2512_v22  ;;  %v573_v34 = vmul.f32 %v2538_v41, %v2629_v13 }
 0x15d   : > { %2180 = vlog2.f32 %v568_v50  ;;  %4177 = vst [vmem:[#allocation47_spill] sm:$0xff] %v2595_v39  ;;  %4180 = vst [vmem:[#allocation50_spill] sm:$0xff] %v2603_v28  ;;  %v625_v50 = vmul.f32 -0.5, %v2547_v40  ;;  %v2610_v33 = vpop.eup %2160  ;;  %v616_v28 = vmul.f32 -0.5, %v2557_v58  ;;  %v601_v39 = vand.u32 2147483647, %v2532_v38 }
 0x15e   : > { %2182 = vlog2.f32 %v559_v43  ;;  %4181 = vst [vmem:[#allocation51_spill] sm:$0xff] %v2610_v33  ;;  %v592_v43 = vand.u32 2147483647, %v2512_v22  ;;  %v644_v33 = vsub.f32 0.0, %v2389_v53  ;;  %v2631_v44 = vadd.f32 1.0, %v562_v9 }
 0x15f   : > { %2184 = vlog2.f32 %v541_v16  ;;  %v2621_v16 = vpop.eup %2162  ;;  %v626_v11 = vadd.f32 1.0, %v625_v50  ;;  %v590_v48 = vadd.f32 1.0, %v589_v26  ;;  %v662_v53 = vmax.f32 %v646_v15, 0.0  ;;  %v2661_v27 = vpop.permute.xlu0 %728 }
 0x160   : > { %4183 = vst [vmem:[#allocation53_spill] sm:$0xff] %v2621_v16  ;;  %v2165_v10 = vpop.eup %2164  ;;  %4184 = vst [vmem:[#allocation54_spill] sm:$0xff] %v2631_v44  ;;  %v608_v16 = vadd.f32 1.0, %v607_v5  ;;  %vm2647_vm7 = vcmp.lt.f32.partialorder %v592_v43, 0.0004427343  ;;  %v660_v4 = vmax.f32 %v644_v33, 0.0 }
 0x161   : > { %v2639_v1 = vpop.eup %2166  ;;  %v628_v5 = vand.u32 2147483647, %v2547_v40  ;;  %v606_v59 = vmul.f32 0.6931472, %v2165_v10  ;;  %v617_v26 = vadd.f32 1.0, %v616_v28  ;;  %v627_v31 = vmul.f32 %v2547_v40, %v626_v11 }
 0x162   : > { %4185 = vst [vmem:[#allocation55_spill] sm:$0xff] %v2639_v1  ;;  %v610_v1 = vand.u32 2147483647, %v2490_v20  ;;  %v619_v44 = vand.u32 2147483647, %v2557_v58  ;;  %v609_v28 = vmul.f32 %v2490_v20, %v608_v16  ;;  %v600_v20 = vmul.f32 %v2532_v38, %v599_v57 }
 0x163   : > { %vm629_vm13 = vcmp.lt.f32.partialorder %v628_v5, 0.0004427343  ;;  %v583_v57 = vand.u32 2147483647, %v2523_v35  ;;  %vm2696_vm12 = vcmp.lt.f32.partialorder %v601_v39, 0.0004427343 }
 0x164   : > { %v2169_v9 = vpop.eup %2168  ;;  %vm2679_vm0 = vcmp.lt.f32.partialorder %v610_v1, 0.0004427343  ;;  %v618_v1 = vmul.f32 %v2557_v58, %v617_v26  ;;  %vm2700_vm14 = vcmp.lt.f32.partialorder %v619_v44, 0.0004427343  ;;  %v2726_v26 = vpop.permute.xlu0 %722  ;;  %v4214_v5 = vld [vmem:[#allocation47_spill] sm:$0xff] }
 0x165   : > { %v2171_v50 = vpop.eup %2170  ;;  %v597_v33 = vmul.f32 0.6931472, %v2169_v9  ;;  %v612_v11 = vsel %vm2679_vm0, %v609_v28, %v606_v59  ;;  %vm4118_vm0 = vcmp.ne.s32.totalorder %v2463_v6, %v2416_v45  ;;  %vm2770_vm2 = vcmp.lt.f32.partialorder %v583_v57, 0.0004427343 }
 0x166   : > { %v2173_v43 = vpop.eup %2172  ;;  %v2677_v62 = vmul.f32 0.6931472, %v2171_v50 }
 0x167   : > { %v2175_v10 = vpop.eup %2174  ;;  %v624_v15 = vmul.f32 0.6931472, %v2173_v43  ;;  %v603_v44 = vsel %vm2696_vm12, %v600_v20, %v597_v33  ;;  %vm851_vm12 = vcmp.lt.s32.totalorder %v2416_v45, %v2485_v18  ;;  %v4196_v43 = vsub.f32 0.0, %v2395_v63 }
 0x168   : > { %v2177_v24 = vpop.eup %2176  ;;  %v579_v39 = vmul.f32 0.6931472, %v2175_v10  ;;  %v4199_v20 = vmov 0.0  }
 0x169   : > { %v2179_v40 = vpop.eup %2178  ;;  %v630_v16 = vsel %vm629_vm13, %v627_v31, %v624_v15  ;;  %v615_v9 = vmul.f32 0.6931472, %v2177_v24  ;;  %vm770_vm13 = vcmp.eq.s32.totalorder %v2627_v29, %v2589_v8  ;;  %v591_v31 = vmul.f32 %v2512_v22, %v590_v48  ;;  %v2757_v24 = vpop.permute.xlu1 %719  ;;  %v4369_v29 = vld [vmem:[#allocation5_spill] sm:$0xff] }
 0x16a   : > { %v2181_v38 = vpop.eup %2180  ;;  %v678_v50 = vadd.f32 %v662_v53, %v630_v16  ;;  %v676_v48 = vadd.f32 %v660_v4, %v612_v11  ;;  %v659_v10 = vmax.f32 %v4196_v43, 0.0  ;;  %v565_v15 = vand.u32 2147483647, %v2553_v25  ;;  %v4223_v43 = vld [vmem:[#allocation49_spill] sm:$0xff] }
 0x16b   : > { %v2183_v58 = vpop.eup %2182  ;;  %v621_v53 = vsel %vm2700_vm14, %v618_v1, %v615_v9  ;;  %v570_v33 = vmul.f32 0.6931472, %v2181_v38  ;;  %v594_v4 = vsel %vm2647_vm7, %v591_v31, %v2677_v62  ;;  %v4200_v62 = vand.u32 2147483647, %v2478_v14 }
 0x16c   : > { %v2185_v22 = vpop.eup %2184  ;;  %v2734_v28 = vadd.f32 %v2400_v12, %v678_v50  ;;  %v677_v51 = vadd.f32 %v661_v61, %v621_v53  ;;  %1881 = vmatpush3.msk.msra.mxu1 %vm2722_vm11, %v678_v50  ;;  %v582_v12 = vmul.f32 %v2523_v35, %v581_v47  ;;  %v2768_v47 = vmul.f32 0.6931472, %v2183_v58  ;;  %v4218_v53 = vld [vmem:[#allocation42_spill] sm:$0xff] }
 0x16d   : > { %1882 = vmatprep.subr.mxu1 %v4199_v20  ;;  %vm2764_vm7 = vcmp.lt.f32.partialorder %v4200_v62, 0.0004427343  ;;  %v675_v36 = vadd.f32 %v659_v10, %v603_v44  ;;  %v4207_v9 = vand.u32 2147483647, %v2538_v41  ;;  %v4213_v41 = vld [vmem:[#allocation54_spill] sm:$0xff]  ;;  %v674_v50 = vadd.f32 %v4214_v5, %v594_v4  ;;  %v4224_v10 = vld [vmem:[#allocation31_spill] sm:$0xff] }
 0x16e   : > { %v2775_v11 = vadd.f32 %v677_v51, %v2407_v23  ;;  %1883 = vmatpush3.msk.msra.mxu1 %vm2753_vm1, %v677_v51  ;;  %1951 = vmatpush3.msk.msra.mxu0 %vm2722_vm11, %v2734_v28  ;;  %v2796_v23 = vmul.f32 0.6931472, %v2179_v40  ;;  %v585_v38 = vsel %vm2770_vm2, %v582_v12, %v579_v39  ;;  %vm2814_vm11 = vmand %vm777_vm9, %vm4116_vm8  ;;  %v564_v13 = vmul.f32 %v2553_v25, %v4213_v41  ;;  %v4217_v39 = vld [vmem:[#allocation17_spill] sm:$0xff]  ;;  %v4222_v25 = vld [vmem:[#allocation18_spill] sm:$0xff] }
 0x16f   : > { %vm2802_vm6 = vcmp.lt.f32.partialorder %v4207_v9, 0.0004427343  ;;  %1884 = vmatprep.subr.mxu1 %v4199_v20  ;;  %1952 = vmatprep.subr.mxu0 %v4199_v20  ;;  %v4216_v58 = vsub.f32 0.0, %v4215_v46  ;;  %v2826_v44 = vadd.f32 %v4217_v39, %v676_v48  ;;  %vm4219_vm9 = vcmp.eq.s32.totalorder %v4218_v53, %v2589_v8  ;;  %v2867_v9 = vpop.permute.xlu0 %716  ;;  %v4240_v41 = vld [vmem:[#allocation25_spill] sm:$0xff]  ;;  %v4252_v53 = vld [vmem:[#allocation15_spill] sm:$0xff] }
 0x170   : > { %vm2834_vm2 = vmand %vm4219_vm9, %vm4117_vm10  ;;  %1885 = vmatpush3.msk.msra.mxu1 %vm2814_vm11, %v676_v48  ;;  %1953 = vmatpush3.msk.msra.mxu0 %vm2753_vm1, %v2775_v11  ;;  %v555_v51 = vmul.f32 %v4224_v10, %v4223_v43  ;;  %v2849_v4 = vmul.f32 0.6931472, %v2185_v22  ;;  %v576_v12 = vsel %vm2802_vm6, %v573_v34, %v570_v33  ;;  %vm2853_vm9 = vcmp.lt.f32.partialorder %v565_v15, 0.0004427343  ;;  %v4229_v48 = vld [vmem:[#allocation30_spill] sm:$0xff]  ;;  %v4251_v40 = vld [vmem:[#allocation37_spill] sm:$0xff] }
 0x171   : > { %v657_v31 = vmax.f32 %v4216_v58, 0.0  ;;  %vm4228_vm10 = vcmp.ne.s32.totalorder %v4227_v17, %v2416_v45  ;;  %vm4230_vm8 = vcmp.eq.s32.totalorder %v4229_v48, %v2589_v8  ;;  %1886 = vmatprep.subr.mxu1 %v4199_v20  ;;  %1954 = vmatprep.subr.mxu0 %v4199_v20  ;;  %v4233_v22 = vand.u32 2147483647, %v4224_v10  ;;  %v4257_v10 = vld [vmem:[#allocation26_spill] sm:$0xff] }
 0x172   : > { %vm2863_vm5 = vmand %vm4230_vm8, %vm4228_vm10  ;;  %v567_v15 = vsel %vm2853_vm9, %v564_v13, %v2768_v47  ;;  %v2881_v1 = vadd.f32 %v675_v36, %v2395_v63  ;;  %vm4236_vm8 = vcmp.ne.s32.totalorder %v2454_v2, %v2416_v45  ;;  %vm4237_vm10 = vcmp.eq.s32.totalorder %v2545_v32, %v2589_v8  ;;  %1955 = vmatpush3.msk.msra.mxu0 %vm2814_vm11, %v2826_v44  ;;  %v4241_v63 = vld [vmem:[#allocation53_spill] sm:$0xff] }
 0x173   : > { %vm2873_vm1 = vcmp.lt.f32.partialorder %v4233_v22, 0.0004427343  ;;  %v673_v34 = vadd.f32 %v657_v31, %v585_v38  ;;  %vm2889_vm6 = vmand %vm4237_vm10, %vm4236_vm8  ;;  %1887 = vmatpush3.msk.msra.mxu1 %vm2863_vm5, %v675_v36  ;;  %v2903_v47 = vmul.f32 0.6931472, %v4241_v63  ;;  %v4242_v38 = vld [vmem:[#allocation52_spill] sm:$0xff]  ;;  %v4243_v13 = vld [vmem:[#allocation33_spill] sm:$0xff]  ;;  %vm4247_vm10 = vcmp.ne.s32.totalorder %v2457_v3, %v2416_v45  ;;  %1956 = vmatprep.subr.mxu0 %v4199_v20 }
 0x174   : > { %v558_v32 = vsel %vm2873_vm1, %v555_v51, %v2796_v23  ;;  %v546_v5 = vmul.f32 %v4243_v13, %v4242_v38  ;;  %v4244_v58 = vand.u32 2147483647, %v4243_v13  ;;  %vm4248_vm11 = vcmp.eq.s32.totalorder %v2581_v42, %v2589_v8  ;;  %v2926_v23 = vpop.permute.xlu1 %713  ;;  %1888 = vmatprep.subr.mxu1 %v4199_v20  ;;  %1957 = vmatpush3.msk.msra.mxu0 %vm2863_vm5, %v2881_v1  ;;  %v4260_v22 = vld [vmem:[#allocation39_spill] sm:$0xff]  ;;  %vm2969_vm5 = vmand %vm770_vm13, %vm4118_vm0  ;;  %v4284_v31 = vld [vmem:[#allocation28_spill] sm:$0xff] }
 0x175   : > { %vm2922_vm9 = vmand %vm4248_vm11, %vm4247_vm10  ;;  %v672_v39 = vadd.f32 %v4251_v40, %v576_v12  ;;  %v2932_v43 = vadd.f32 %v4252_v53, %v674_v50  ;;  %vm4253_vm1 = vcmp.ne.s32.totalorder %v2432_v55, %v2416_v45  ;;  %vm4254_vm10 = vcmp.eq.s32.totalorder %v2608_v0, %v2589_v8  ;;  %1889 = vmatpush3.msk.msra.mxu1 %vm2783_vm4, %v674_v50  ;;  %v4258_v0 = vld [vmem:[#allocation44_spill] sm:$0xff]  ;;  %v4259_v12 = vld [vmem:[#allocation45_spill] sm:$0xff] }
 0x176   : > { %vm2912_vm8 = vcmp.lt.f32.partialorder %v4244_v58, 0.0004427343  ;;  %vm2940_vm11 = vmand %vm4254_vm10, %vm4253_vm1  ;;  %vm910_vm1 = vcmp.ge.s32.totalorder %v2412_v30, %v2485_v18  ;;  %v537_v51 = vmul.f32 %v2478_v14, %v4258_v0  ;;  %v527_v62 = vadd.f32 1.0, %v4259_v12  ;;  %1890 = vmatprep.subr.mxu1 %v4199_v20  ;;  %1958 = vmatprep.subr.mxu0 %v4199_v20  ;;  %v4285_v40 = vld [vmem:[#allocation36_spill] sm:$0xff] }
 0x177   : > { %v549_v48 = vsel %vm2912_vm8, %v546_v5, %v2849_v4  ;;  %v671_v50 = vadd.f32 %v4260_v22, %v567_v15  ;;  %vm4263_vm10 = vcmp.ge.s32.totalorder %v2416_v45, %v2485_v18  ;;  %vm4264_vm8 = vcmp.eq.s32.totalorder %v2405_v21, 1  ;;  %1891 = vmatpush3.msk.msra.mxu1 %vm2889_vm6, %v673_v34  ;;  %1959 = vmatpush3.msk.msra.mxu0 %vm2783_vm4, %v2932_v43  ;;  %v4271_v15 = vld [vmem:[#allocation35_spill] sm:$0xff]  ;;  %v4283_v5 = vld [vmem:[#allocation50_spill] sm:$0xff]  ;;  %v4325_v12 = vld [vmem:[#allocation24_spill] sm:$0xff] }
 0x178   : > { %vm2980_vm3 = vmand %vm4264_vm8, %vm4263_vm10  ;;  %v2985_v4 = vadd.f32 %v673_v34, %v4215_v46  ;;  %vm4267_vm10 = vcmp.eq.s32.totalorder %v2405_v21, 0  ;;  %vm4121_vm13 = vcmp.eq.s32.totalorder %v2416_v45, 0  ;;  %vm877_vm0 = vcmp.lt.s32.totalorder %v2412_v30, %v2485_v18  ;;  %v4270_v46 = vld [vmem:[#allocation55_spill] sm:$0xff]  ;;  %1892 = vmatprep.subr.mxu1 %v4199_v20  ;;  %1960 = vmatprep.subr.mxu0 %v4199_v20 }
 0x179   : > { %vm3001_vm8 = vmand %vm4267_vm10, %vm851_vm12  ;;  %v540_v16 = vsel %vm2764_vm7, %v537_v51, %v2903_v47  ;;  %v525_v33 = vmul.f32 0.6931472, %v4270_v46  ;;  %v670_v34 = vadd.f32 %v4271_v15, %v558_v32  ;;  %vm4272_vm12 = vcmp.ne.s32.totalorder %v2435_v56, %v2416_v45  ;;  %v4279_v32 = vld [vmem:[#allocation13_spill] sm:$0xff]  ;;  %1893 = vmatpush3.msk.msra.mxu1 %vm2834_vm2, %v672_v39  ;;  %v4303_v46 = vld [vmem:[#allocation32_spill] sm:$0xff] }
 0x17a   : > { %vm4273_vm4 = vcmp.eq.s32.totalorder %v2661_v27, %v2589_v8  ;;  %vm3032_vm7 = vmand %vm4120_vm15, %vm910_vm1  ;;  %v4278_v27 = vld [vmem:[#allocation41_spill] sm:$0xff]  ;;  %v3040_v38 = vadd.f32 %v4279_v32, %v672_v39  ;;  %1961 = vmatpush3.msk.msra.mxu0 %vm2889_vm6, %v2985_v4  ;;  %vm4280_vm1 = vcmp.lt.s32.totalorder %v2416_v45, %v2488_v19  ;;  %v516_v58 = vmul.f32 0.6931472, %v4283_v5  ;;  %1894 = vmatprep.subr.mxu1 %v4199_v20  ;;  %v4319_v5 = vld [vmem:[#allocation11_spill] sm:$0xff] }
 0x17b   : > { %vm3021_vm10 = vmand %vm4273_vm4, %vm4272_vm12  ;;  %v509_v47 = vadd.f32 1.0, %v4278_v27  ;;  %v528_v57 = vmul.f32 %v4284_v31, %v527_v62  ;;  %v669_v39 = vadd.f32 %v4285_v40, %v549_v48  ;;  %vm4286_vm6 = vcmp.ne.s32.totalorder %v2466_v7, %v2416_v45  ;;  %1962 = vmatprep.subr.mxu0 %v4199_v20  ;;  %v4298_v62 = vld [vmem:[#allocation14_spill] sm:$0xff]  ;;  %1895 = vmatpush3.msk.msra.mxu1 %vm2922_vm9, %v671_v50 }
 0x17c   : > { %vm3052_vm12 = vmand %vm2980_vm3, %vm4280_vm1  ;;  %vm4287_vm3 = vcmp.eq.s32.totalorder %v2675_v37, %v2589_v8  ;;  %v4288_v53 = vmov 0  ;;  %v4290_v0 = vmov 0  ;;  %vm4292_vm4 = vcmp.ge.s32.totalorder %v2421_v49, %v2485_v18  ;;  %1963 = vmatpush3.msk.msra.mxu0 %vm2834_vm2, %v3040_v38  ;;  %1896 = vmatprep.subr.mxu1 %v4199_v20 }
 0x17d   : > { %vm3069_vm1 = vmand %vm4287_vm3, %vm4286_vm6  ;;  %v4295_v51 = vand.u32 2147483647, %v4284_v31  ;;  %v3102_v48 = vadd.f32 %v671_v50, %v4298_v62  ;;  %v4300_v22 = vmov 0  ;;  %v4302_v50 = vld [vmem:[#allocation51_spill] sm:$0xff]  ;;  %v668_v59 = vadd.f32 %v4303_v46, %v540_v16  ;;  %1964 = vmatprep.subr.mxu0 %v4199_v20  ;;  %1897 = vmatpush3.msk.msra.mxu1 %vm2940_vm11, %v670_v34  ;;  %v4340_v46 = vld [vmem:[#allocation34_spill] sm:$0xff] }
 0x17e   : > { %v4289_v53 = vsel %vm3069_vm1, 4294967295, %v4288_v53  ;;  %vm3080_vm14 = vmand %vm4121_vm13, %vm877_vm0  ;;  %vm4299_vm0 = vcmp.lt.s32.totalorder %v2412_v30, %v2488_v19  ;;  %v507_v14 = vmul.f32 0.6931472, %v4302_v50  ;;  %vm4304_vm2 = vcmp.ne.s32.totalorder %v4222_v25, %v2416_v45  ;;  %1898 = vmatprep.subr.mxu1 %v4199_v20  ;;  %v4362_v50 = vld [vmem:[#allocation27_spill] sm:$0xff] }
 0x17f   : > { %v4291_v0 = vsel %vm3080_vm14, 4294967295, %v4290_v0  ;;  %vm3089_vm6 = vmand %vm4120_vm15, %vm4292_vm4  ;;  %vm3097_vm1 = vcmp.lt.f32.partialorder %v4295_v51, 0.0004427343  ;;  %vm4308_vm15 = vcmp.lt.s32.totalorder %v2421_v49, %v2485_v18  ;;  %v4309_v16 = vmov 0  ;;  %1965 = vmatpush3.msk.msra.mxu0 %vm2922_vm9, %v3102_v48  ;;  %v4324_v51 = vld [vmem:[#allocation43_spill] sm:$0xff]  ;;  %1899 = vmatpush3.msk.msra.mxu1 %vm2969_vm5, %v669_v39 }
 0x180   : > { %vm3114_vm4 = vmand %vm3032_vm7, %vm4299_vm0  ;;  %v531_v15 = vsel %vm3097_vm1, %v528_v57, %v525_v33  ;;  %vm4305_vm7 = vcmp.eq.s32.totalorder %v2726_v26, %v2589_v8  ;;  %vm4311_vm3 = vcmp.ge.s32.totalorder %v2443_v60, %v2485_v18  ;;  %v4315_v33 = vld [vmem:[#allocation23_spill] sm:$0xff]  ;;  %v3165_v31 = vadd.f32 %v4319_v5, %v670_v34  ;;  %v4323_v34 = vld [vmem:[#allocation46_spill] sm:$0xff]  ;;  %1966 = vmatprep.subr.mxu0 %v4199_v20 }
 0x181   : > { %v4301_v22 = vsel %vm3114_vm4, 4294967295, %v4300_v22  ;;  %vm3132_vm0 = vmand %vm4305_vm7, %vm4304_vm2  ;;  %vm4312_vm2 = vcmp.eq.s32.totalorder %v2416_v45, 1  ;;  %v4316_v27 = vand.u32 2147483647, %v4315_v33  ;;  %v4321_v57 = vmov 0  ;;  %1900 = vmatprep.subr.mxu1 %v4199_v20 }
 0x182   : > { %vm3143_vm1 = vmand %vm4121_vm13, %vm4308_vm15  ;;  %vm4320_vm15 = vcmp.lt.s32.totalorder %v2421_v49, %v2488_v19  ;;  %v498_v40 = vmul.f32 0.6931472, %v4323_v34  ;;  %v510_v62 = vmul.f32 %v4325_v12, %v509_v47  ;;  %vm4326_vm9 = vcmp.ne.s32.totalorder %v4240_v41, %v2416_v45  ;;  %1967 = vmatpush3.msk.msra.mxu0 %vm2940_vm11, %v3165_v31  ;;  %v4346_v34 = vld [vmem:[#allocation19_spill] sm:$0xff]  ;;  %1901 = vmatpush3.msk.msra.mxu1 %vm3021_vm10, %v668_v59 }
 0x183   : > { %v4310_v16 = vsel %vm3143_vm1, 4294967295, %v4309_v16  ;;  %vm3152_vm7 = vmand %vm4312_vm2, %vm4311_vm3  ;;  %vm3160_vm4 = vcmp.lt.f32.partialorder %v4316_v27, 0.0004427343  ;;  %vm4330_vm14 = vcmp.lt.s32.totalorder %v2443_v60, %v2485_v18  ;;  %v4331_v47 = vmov 0  ;;  %v4341_v27 = vld [vmem:[#allocation12_spill] sm:$0xff]  ;;  %1968 = vmatprep.subr.mxu0 %v4199_v20  ;;  %1902 = vmatprep.subr.mxu1 %v4199_v20 }
 0x184   : > { %vm3177_vm3 = vmand %vm3089_vm6, %vm4320_vm15  ;;  %v522_v36 = vsel %vm3160_vm4, %v4324_v51, %v516_v58  ;;  %vm4327_vm6 = vcmp.eq.s32.totalorder %v2757_v24, %v2589_v8  ;;  %vm4333_vm2 = vcmp.ge.s32.totalorder %v4227_v17, %v2485_v18  ;;  %v4337_v58 = vand.u32 2147483647, %v4325_v12 }
 0x185   : > { %v4322_v57 = vsel %vm3177_vm3, 4294967295, %v4321_v57  ;;  %vm3196_vm15 = vmand %vm4327_vm6, %vm4326_vm9  ;;  %vm4334_vm9 = vcmp.eq.s32.totalorder %v2416_v45, 1  ;;  %v667_v33 = vadd.f32 %v4340_v46, %v531_v15  ;;  %v3230_v32 = vadd.f32 %v669_v39, %v4341_v27  ;;  %v4345_v15 = vld [vmem:[#allocation38_spill] sm:$0xff]  ;;  %v4347_v39 = vld [vmem:[#allocation48_spill] sm:$0xff] }
 0x186   : > { %vm3207_vm4 = vmand %vm4121_vm13, %vm4330_vm14  ;;  %vm3224_vm3 = vcmp.lt.f32.partialorder %v4337_v58, 0.0004427343  ;;  %vm4342_vm14 = vcmp.lt.s32.totalorder %v2443_v60, %v2488_v19  ;;  %v4343_v5 = vmov 0  ;;  %v501_v51 = vmul.f32 %v4346_v34, %v4345_v15  ;;  %v4363_v27 = vld [vmem:[#allocation9_spill] sm:$0xff] }
 0x187   : > { %v4332_v47 = vsel %vm3207_vm4, 4294967295, %v4331_v47  ;;  %vm3216_vm6 = vmand %vm4334_vm9, %vm4333_vm2  ;;  %v489_v12 = vmul.f32 0.6931472, %v4347_v39  ;;  %v513_v42 = vsel %vm3224_vm3, %v510_v62, %v507_v14  ;;  %vm4348_vm11 = vcmp.ne.s32.totalorder %v4257_v10, %v2416_v45  ;;  %1969 = vmatpush3.msk.msra.mxu0 %vm2969_vm5, %v3230_v32  ;;  %v4371_v39 = vld [vmem:[#allocation40_spill] sm:$0xff] }
 0x188   : > { %vm3242_vm2 = vmand %vm3152_vm7, %vm4342_vm14  ;;  %vm4349_vm7 = vcmp.eq.s32.totalorder %v2867_v9, %v2589_v8  ;;  %vm4352_vm9 = vcmp.lt.s32.totalorder %v4227_v17, %v2485_v18  ;;  %vm4355_vm1 = vcmp.ge.s32.totalorder %v2426_v52, %v2485_v18  ;;  %vm938_vm4 = vcmp.lt.s32.totalorder %v2426_v52, %v2488_v19  ;;  %1970 = vmatprep.subr.mxu0 %v4199_v20  ;;  %v4392_v9 = vld [vmem:[#allocation6_spill] sm:$0xff] }
 0x189   : > { %v4344_v5 = vsel %vm3242_vm2, 4294967295, %v4343_v5  ;;  %vm3259_vm14 = vmand %vm4349_vm7, %vm4348_vm11  ;;  %vm4356_vm11 = vcmp.eq.s32.totalorder %v2416_v45, 1  ;;  %v4359_v62 = vand.u32 2147483647, %v4346_v34  ;;  %v666_v46 = vadd.f32 %v4362_v50, %v522_v36 }
 0x18a   : > { %vm3270_vm3 = vmand %vm4121_vm13, %vm4352_vm9  ;;  %v3293_v15 = vadd.f32 %v4363_v27, %v668_v59  ;;  %v4364_v34 = vmov 0  ;;  %vm4366_vm9 = vcmp.lt.s32.totalorder %v4227_v17, %v2488_v19  ;;  %v4370_v13 = vsub.f32 0.0, %v4369_v29  ;;  %v4384_v27 = vld [vmem:[#allocation10_spill] sm:$0xff] }
 0x18b   : > { %vm3279_vm7 = vmand %vm4356_vm11, %vm4355_vm1  ;;  %vm3287_vm2 = vcmp.lt.f32.partialorder %v4359_v62, 0.0004427343  ;;  %v4372_v62 = vld [vmem:[#allocation22_spill] sm:$0xff]  ;;  %vm4389_vm5 = vcmp.eq.s32.totalorder %v2416_v45, 1  ;;  %v2228_v26 = vmov 1.0   ;;  %v4436_v14 = vmov 0 }
 0x18c   : > { %vm3304_vm1 = vmor %vm3001_vm8, %vm3052_vm12  ;;  %v504_v61 = vsel %vm3287_vm2, %v501_v51, %v498_v40  ;;  %v648_v59 = vmax.f32 %v4370_v13, 0.0  ;;  %v492_v50 = vmul.f32 %v4372_v62, %v4371_v39  ;;  %vm4373_vm8 = vcmp.ne.s32.totalorder %v2405_v21, %v2416_v45  ;;  %v4383_v51 = vld [vmem:[#allocation29_spill] sm:$0xff]  ;;  %1971 = vmatpush3.msk.msra.mxu0 %vm3021_vm10, %v3293_v15 }
 0x18d   : > { %v4365_v34 = vsel %vm3304_vm1, 4294967295, %v4364_v34  ;;  %vm3313_vm11 = vmand %vm3216_vm6, %vm4366_vm9  ;;  %vm4374_vm12 = vcmp.eq.s32.totalorder %v2926_v23, %v2589_v8  ;;  %vm4377_vm2 = vcmp.lt.s32.totalorder %v2426_v52, %v2485_v18  ;;  %v4378_v40 = vmov 0  ;;  %1972 = vmatprep.subr.mxu0 %v4199_v20 }
 0x18e   : > { %vm3331_vm6 = vmand %vm4374_vm12, %vm4373_vm8  ;;  %v4380_v8 = vand.u32 2147483647, %v4372_v62  ;;  %v665_v58 = vadd.f32 %v4383_v51, %v513_v42  ;;  %v3356_v13 = vadd.f32 %v667_v33, %v4384_v27  ;;  %vm4385_vm12 = vnez %v4289_v53 }
 0x18f   : > { %vm3342_vm9 = vmand %vm4121_vm13, %vm4377_vm2  ;;  %1903 = vmatpush3.msk.msra.mxu1 %vm4385_vm12, %v667_v33  ;;  %vm4388_vm10 = vcmp.ge.s32.totalorder %v2454_v2, %v2485_v18  ;;  %v664_v33 = vadd.f32 %v648_v59, %v504_v61  ;;  %v4393_v62 = vsub.f32 0.0, %v4392_v9  ;;  %v4397_v23 = vmov 0 }
 0x190   : > { %v4379_v40 = vsel %vm3342_vm9, 4294967295, %v4378_v40  ;;  %vm3350_vm8 = vcmp.lt.f32.partialorder %v4380_v8, 0.0004427343  ;;  %vm3368_vm2 = vmand %vm3279_vm7, %vm938_vm4  ;;  %1904 = vmatprep.subr.mxu1 %v4199_v20  ;;  %1973 = vmatpush3.msk.msra.mxu0 %vm4385_vm12, %v3356_v13  ;;  %vm4395_vm7 = vnez %v4301_v22  ;;  %vm4400_vm4 = vcmp.eq.s32.totalorder %v2416_v45, 0  ;;  %v4407_v22 = vld [vmem:[#allocation8_spill] sm:$0xff] }
 0x191   : > { %v495_v42 = vsel %vm3350_vm8, %v492_v50, %v489_v12  ;;  %vm3383_vm9 = vmand %vm4389_vm5, %vm4388_vm10  ;;  %v647_v12 = vmax.f32 %v4393_v62, 0.0  ;;  %v4394_v50 = vld [vmem:[#allocation7_spill] sm:$0xff]  ;;  %1905 = vmatpush3.msk.msra.mxu1 %vm3132_vm0, %v666_v46  ;;  %vm4396_vm5 = vnez %v4291_v0  ;;  %vm4399_vm10 = vcmp.lt.s32.totalorder %v2454_v2, %v2485_v18  ;;  %1974 = vmatprep.subr.mxu0 %v4199_v20 }
 0x192   : > { %v3392_v8 = vadd.f32 %v4394_v50, %v666_v46  ;;  %vm3403_vm8 = vmor %vm4396_vm5, %vm4395_vm7  ;;  %v4401_v61 = vmov 0  ;;  %vm871_vm12 = vcmp.lt.s32.totalorder %v2429_v54, %v2485_v18  ;;  %1906 = vmatprep.subr.mxu1 %v4199_v20  ;;  %vm4403_vm7 = vcmp.ge.s32.totalorder %v2429_v54, %v2485_v18 }
 0x193   : > { %v4398_v23 = vsel %vm3403_vm8, 4294967295, %v4397_v23  ;;  %vm3412_vm13 = vmand %vm4400_vm4, %vm4399_vm10  ;;  %vm4404_vm5 = vcmp.eq.s32.totalorder %v2416_v45, 1  ;;  %v663_v0 = vadd.f32 %v647_v12, %v495_v42  ;;  %v3432_v46 = vadd.f32 %v665_v58, %v4407_v22  ;;  %1907 = vmatpush3.msk.msra.mxu1 %vm3196_vm15, %v665_v58 }
 0x194   : > { %v4402_v61 = vsel %vm3412_vm13, 4294967295, %v4401_v61  ;;  %vm3425_vm8 = vmand %vm4404_vm5, %vm4403_vm7  ;;  %1975 = vmatpush3.msk.msra.mxu0 %vm3132_vm0, %v3392_v8  ;;  %vm4408_vm10 = vnez %v4322_v57  ;;  %vm4409_vm7 = vnez %v4310_v16  ;;  %v4410_v59 = vmov 0  ;;  %1908 = vmatprep.subr.mxu1 %v4199_v20 }
 0x195   : > { %vm3443_vm5 = vmor %vm4409_vm7, %vm4408_vm10  ;;  %vm4412_vm4 = vcmp.lt.s32.totalorder %v2454_v2, %v2488_v19  ;;  %vm903_vm0 = vcmp.ge.s32.totalorder %v2457_v3, %v2485_v18  ;;  %1976 = vmatprep.subr.mxu0 %v4199_v20  ;;  %vm4415_vm10 = vcmp.eq.s32.totalorder %v2416_v45, 0  ;;  %v3469_v16 = vadd.f32 %v4369_v29, %v664_v33  ;;  %1909 = vmatpush3.msk.msra.mxu1 %vm3259_vm14, %v664_v33 }
 0x196   : > { %v4411_v59 = vsel %vm3443_vm5, 4294967295, %v4410_v59  ;;  %vm3452_vm13 = vmand %vm3383_vm9, %vm4412_vm4  ;;  %1977 = vmatpush3.msk.msra.mxu0 %vm3196_vm15, %v3432_v46  ;;  %vm4418_vm9 = vnez %v4344_v5  ;;  %v4420_v57 = vmov 0  ;;  %vm902_vm15 = vcmp.ge.s32.totalorder %v2432_v55, %v2485_v18  ;;  %1910 = vmatprep.subr.mxu1 %v4199_v20 }
 0x197   : > { %vm3462_vm7 = vmand %vm4415_vm10, %vm871_vm12  ;;  %vm4419_vm12 = vnez %v4332_v47  ;;  %vm4422_vm10 = vcmp.lt.s32.totalorder %v2429_v54, %v2488_v19  ;;  %1978 = vmatprep.subr.mxu0 %v4199_v20  ;;  %v3506_v47 = vadd.f32 %v663_v0, %v4392_v9  ;;  %1911 = vmatpush3.msk.msra.mxu1 %vm3331_vm6, %v663_v0  ;;  %v4428_v5 = vmov 0 }
 0x198   : > { %vm3480_vm4 = vmor %vm4419_vm12, %vm4418_vm9  ;;  %vm4425_vm9 = vcmp.eq.s32.totalorder %v2416_v45, 1  ;;  %1979 = vmatpush3.msk.msra.mxu0 %vm3259_vm14, %v3469_v16  ;;  %vm869_vm14 = vcmp.lt.s32.totalorder %v2432_v55, %v2485_v18  ;;  %1913 = vmatmul.mubr.msk.f32.vlgmr.msra.gmra.mxu1 %vm3304_vm1, %v2228_v26  ;;  %v4442_v24 = vmov 0 }
 0x199   : > { %v4421_v57 = vsel %vm3480_vm4, 4294967295, %v4420_v57  ;;  %vm3489_vm5 = vmand %vm3425_vm8, %vm4422_vm10  ;;  %vm4431_vm10 = vcmp.eq.s32.totalorder %v2416_v45, 0  ;;  %1980 = vmatprep.subr.mxu0 %v4199_v20  ;;  %vm934_vm4 = vcmp.lt.s32.totalorder %v2432_v55, %v2488_v19  ;;  %1915 = vmatprep.subr.mxu1 %v4199_v20 }
 0x19a   : > { %vm3499_vm12 = vmand %vm4425_vm9, %vm903_vm0  ;;  %vm4430_vm0 = vcmp.lt.s32.totalorder %v2457_v3, %v2485_v18  ;;  %1981 = vmatpush3.msk.msra.mxu0 %vm3331_vm6, %v3506_v47  ;;  %vm901_vm6 = vcmp.ge.s32.totalorder %v2463_v6, %v2485_v18 }
 0x19b   : > { %vm3517_vm8 = vmor %vm3270_vm3, %vm3313_vm11  ;;  %vm4434_vm3 = vcmp.eq.s32.totalorder %v2416_v45, 1  ;;  %2020 = vmatprep.subr.mxu0 %v4199_v20  ;;  %1983 = vmatmul.mubr.msk.f32.vlgmr.msra.gmra.mxu0 %vm3304_vm1, %v2228_v26  ;;  %vm4446_vm1 = vnez %v4402_v61 }
 0x19c   : > { %v4429_v5 = vsel %vm3517_vm8, 4294967295, %v4428_v5  ;;  %vm3526_vm9 = vmand %vm4431_vm10, %vm4430_vm0  ;;  %vm4435_vm0 = vnez %v4379_v40  ;;  %v4447_v40 = vmov 0 }
 0x19d   : > { %vm918_vm11 = vmand %vm4434_vm3, %vm902_vm15  ;;  %vm4438_vm15 = vcmp.lt.s32.totalorder %v2457_v3, %v2488_v19 }
 0x19e   : > { %vm3548_vm10 = vmor %vm4435_vm0, %vm3368_vm2  ;;  %vm4441_vm2 = vcmp.eq.s32.totalorder %v2416_v45, 0 }
 0x19f   : > { %v4437_v14 = vsel %vm3548_vm10, 4294967295, %v4436_v14  ;;  %vm3557_vm3 = vmand %vm3499_vm12, %vm4438_vm15  ;;  %vm868_vm12 = vcmp.lt.s32.totalorder %v2463_v6, %v2485_v18  ;;  %vm4444_vm15 = vcmp.ne.s32.totalorder %v2412_v30, %v2416_v45  ;;  %vm4445_vm10 = vmmov 0  }
 0x1a0   : > { %vm3569_vm0 = vmand %vm4441_vm2, %vm869_vm14  ;;  %2021 = vmatpush3.msk.msra.mxu0 %vm4444_vm15, %v2734_v28  ;;  %2052 = vmatprep.mubr.msk.f32.mxu0 %vm4445_vm10, %v4199_v20  ;;  %vm900_vm2 = vcmp.ge.s32.totalorder %v2435_v56, %v2485_v18  ;;  %vm4451_vm15 = vnez %v4398_v23  ;;  %vm4452_vm10 = vcmp.eq.s32.totalorder %v2416_v45, 1  ;;  %v4454_v30 = vmov 0 }
 0x1a1   : > { %v4443_v24 = vsel %vm3569_vm0, 4294967295, %v4442_v24  ;;  %vm3585_vm8 = vmor %vm4446_vm1, %vm3452_vm13  ;;  %2022 = vmatprep.subr.mxu0 %v4199_v20  ;;  %1916 = vmatpush3.msk.msra.mxu1 %vm4451_vm15, %v2228_v26  ;;  %vm933_vm13 = vcmp.lt.s32.totalorder %v2463_v6, %v2488_v19  ;;  %vm4453_vm1 = vcmp.ne.s32.totalorder %v2421_v49, %v2416_v45  ;;  %vm932_vm15 = vcmp.lt.s32.totalorder %v2435_v56, %v2488_v19 }
 0x1a2   : > { %v4448_v40 = vsel %vm3585_vm8, 4294967295, %v4447_v40  ;;  %vm3589_vm14 = vmand %vm918_vm11, %vm934_vm4  ;;  %2023 = vmatpush3.msk.msra.mxu0 %vm4453_vm1, %v2775_v11  ;;  %1917 = vmatprep.subr.mxu1 %v4199_v20  ;;  %vm4456_vm11 = vcmp.eq.s32.totalorder %v2416_v45, 0  ;;  %vm4459_vm1 = vnez %v4411_v59 }
 0x1a3   : > { %vm917_vm0 = vmand %vm4452_vm10, %vm901_vm6  ;;  %vm867_vm6 = vcmp.lt.s32.totalorder %v2435_v56, %v2485_v18  ;;  %2024 = vmatprep.subr.mxu0 %v4199_v20  ;;  %1918 = vmatpush3.msk.msra.mxu1 %vm4459_vm1, %v2228_v26 }
 0x1a4   : > { %vm3612_vm4 = vmor %vm3462_vm7, %vm3489_vm5  ;;  %vm4460_vm5 = vcmp.eq.s32.totalorder %v2416_v45, 1  ;;  %1919 = vmatprep.subr.mxu1 %v4199_v20 }
 0x1a5   : > { %v4455_v30 = vsel %vm3612_vm4, 4294967295, %v4454_v30  ;;  %vm3618_vm10 = vmand %vm4456_vm11, %vm868_vm12  ;;  %vm4461_vm12 = vcmp.ne.s32.totalorder %v2443_v60, %v2416_v45 }
 0x1a6   : > { %vm916_vm7 = vmand %vm4460_vm5, %vm900_vm2  ;;  %2025 = vmatpush3.msk.msra.mxu0 %vm4461_vm12, %v2826_v44  ;;  %vm899_vm2 = vcmp.ge.s32.totalorder %v2466_v7, %v2485_v18  ;;  %vm4466_vm5 = vnez %v4421_v57  ;;  %vm4467_vm12 = vcmp.eq.s32.totalorder %v2416_v45, 0 }
 0x1a7   : > { %vm3641_vm11 = vmor %vm3526_vm9, %vm3557_vm3  ;;  %2026 = vmatprep.subr.mxu0 %v4199_v20  ;;  %1920 = vmatpush3.msk.msra.mxu1 %vm4466_vm5, %v2228_v26  ;;  %vm4470_vm9 = vcmp.ne.s32.totalorder %v4227_v17, %v2416_v45  ;;  %vm4471_vm3 = vnez %v4443_v24  ;;  %v4479_v17 = vmov 0 }
 0x1a8   : > { %vm3645_vm1 = vmand %vm917_vm0, %vm933_vm13  ;;  %2027 = vmatpush3.msk.msra.mxu0 %vm4470_vm9, %v2881_v1  ;;  %1921 = vmatprep.subr.mxu1 %v4199_v20  ;;  %vm4477_vm9 = vcmp.eq.s32.totalorder %v2416_v45, 1  ;;  %v4486_v1 = vmov 0 }
 0x1a9   : > { %vm3657_vm4 = vmand %vm4467_vm12, %vm867_vm6  ;;  %vm866_vm6 = vcmp.lt.s32.totalorder %v2466_v7, %v2485_v18  ;;  %2028 = vmatprep.subr.mxu0 %v4199_v20  ;;  %vm4476_vm12 = vnez %v4429_v5 }
 0x1aa   : > { %vm3670_vm0 = vmor %vm4471_vm3, %vm3589_vm14  ;;  %1922 = vmatpush3.msk.msra.mxu1 %vm4476_vm12, %v2228_v26  ;;  %vm931_vm14 = vcmp.lt.s32.totalorder %v2466_v7, %v2488_v19  ;;  %vm4481_vm3 = vnez %v4437_v14 }
 0x1ab   : > { %vm3674_vm13 = vmand %vm916_vm7, %vm932_vm15  ;;  %vm4478_vm15 = vcmp.ne.s32.totalorder %v2426_v52, %v2416_v45  ;;  %1923 = vmatprep.subr.mxu1 %v4199_v20 }
 0x1ac   : > { %vm915_vm5 = vmand %vm4477_vm9, %vm899_vm2  ;;  %2029 = vmatpush3.msk.msra.mxu0 %vm4478_vm15, %v2932_v43  ;;  %vm898_vm2 = vcmp.ge.s32.totalorder %v4222_v25, %v2485_v18  ;;  %1924 = vmatpush3.msk.msra.mxu1 %vm4481_vm3, %v2228_v26  ;;  %vm4482_vm9 = vcmp.eq.s32.totalorder %v2416_v45, 0 }
 0x1ad   : > { %vm3697_vm7 = vmor %vm3618_vm10, %vm3645_vm1  ;;  %2030 = vmatprep.subr.mxu0 %v4199_v20  ;;  %vm865_vm10 = vcmp.lt.s32.totalorder %v4222_v25, %v2485_v18  ;;  %vm4485_vm1 = vcmp.ne.s32.totalorder %v2454_v2, %v2416_v45  ;;  %1925 = vmatprep.subr.mxu1 %v4199_v20 }
 0x1ae   : > { %v4480_v17 = vsel %vm3697_vm7, 4294967295, %v4479_v17  ;;  %vm3709_vm15 = vmand %vm4482_vm9, %vm866_vm6  ;;  %2031 = vmatpush3.msk.msra.mxu0 %vm4485_vm1, %v2985_v4  ;;  %vm897_vm9 = vcmp.ge.s32.totalorder %v4240_v41, %v2485_v18  ;;  %1926 = vmatpush3.msk.msra.mxu1 %vm3585_vm8, %v2228_v26  ;;  %vm4490_vm1 = vcmp.eq.s32.totalorder %v2416_v45, 1  ;;  %vm864_vm8 = vcmp.lt.s32.totalorder %v4240_v41, %v2485_v18 }
 0x1af   : > { %vm3724_vm3 = vmor %vm3657_vm4, %vm3674_vm13  ;;  %2032 = vmatprep.subr.mxu0 %v4199_v20  ;;  %vm930_vm4 = vcmp.lt.s32.totalorder %v4222_v25, %v2488_v19  ;;  %1927 = vmatprep.subr.mxu1 %v4199_v20  ;;  %vm4492_vm13 = vcmp.eq.s32.totalorder %v2416_v45, 0 }
 0x1b0   : > { %v4487_v1 = vsel %vm3724_vm3, 4294967295, %v4486_v1  ;;  %vm3728_vm6 = vmand %vm915_vm5, %vm931_vm14  ;;  %vm4491_vm5 = vcmp.ne.s32.totalorder %v2429_v54, %v2416_v45  ;;  %vm929_vm3 = vcmp.lt.s32.totalorder %v4240_v41, %v2488_v19 }
 0x1b1   : > { %vm914_vm12 = vmand %vm4490_vm1, %vm898_vm2  ;;  %2033 = vmatpush3.msk.msra.mxu0 %vm4491_vm5, %v3040_v38  ;;  %vm4495_vm2 = vnez %v4455_v30 }
 0x1b2   : > { %vm3749_vm14 = vmand %vm4492_vm13, %vm865_vm10  ;;  %2034 = vmatprep.subr.mxu0 %v4199_v20  ;;  %1928 = vmatpush3.msk.msra.mxu1 %vm4495_vm2, %v2228_v26  ;;  %vm4496_vm10 = vcmp.ne.s32.totalorder %v2457_v3, %v2416_v45  ;;  %vm4497_vm2 = vcmp.eq.s32.totalorder %v2416_v45, 0 }
 0x1b3   : > { %vm913_vm5 = vmand %vm4490_vm1, %vm897_vm9  ;;  %2035 = vmatpush3.msk.msra.mxu0 %vm4496_vm10, %v3102_v48  ;;  %1929 = vmatprep.subr.mxu1 %v4199_v20  ;;  %vm4498_vm1 = vcmp.ne.s32.totalorder %v2432_v55, %v2416_v45 }
 0x1b4   : > { %vm946_vm13 = vmand %vm914_vm12, %vm930_vm4  ;;  %2036 = vmatprep.subr.mxu0 %v4199_v20  ;;  %1930 = vmatpush3.msk.msra.mxu1 %vm3641_vm11, %v2228_v26 }
 0x1b5   : > { %vm880_vm9 = vmand %vm4497_vm2, %vm864_vm8  ;;  %2037 = vmatpush3.msk.msra.mxu0 %vm4498_vm1, %v3165_v31  ;;  %1931 = vmatprep.subr.mxu1 %v4199_v20  ;;  %vm896_vm8 = vcmp.ge.s32.totalorder %v4257_v10, %v2485_v18  ;;  %vm895_vm2 = vcmp.ge.s32.totalorder %v2405_v21, %v2485_v18  ;;  %vm928_vm1 = vcmp.lt.s32.totalorder %v4257_v10, %v2488_v19 }
 0x1b6   : > { %vm945_vm10 = vmand %vm913_vm5, %vm929_vm3  ;;  %2038 = vmatprep.subr.mxu0 %v4199_v20  ;;  %1932 = vmatpush3.msk.msra.mxu1 %vm3670_vm0, %v2228_v26  ;;  %vm4501_vm3 = vcmp.ne.s32.totalorder %v2463_v6, %v2416_v45  ;;  %vm4507_vm5 = vcmp.eq.s32.totalorder %v2416_v45, 1 }
 0x1b7   : > { %vm3787_vm12 = vmor %vm3709_vm15, %vm3728_vm6  ;;  %2039 = vmatpush3.msk.msra.mxu0 %vm4501_vm3, %v3230_v32  ;;  %1933 = vmatprep.subr.mxu1 %v4199_v20  ;;  %vm863_vm15 = vcmp.lt.s32.totalorder %v4257_v10, %v2485_v18 }
 0x1b8   : > { %vm3800_vm4 = vmor %vm3749_vm14, %vm946_vm13  ;;  %2040 = vmatprep.subr.mxu0 %v4199_v20  ;;  %1934 = vmatpush3.msk.msra.mxu1 %vm3697_vm7, %v2228_v26  ;;  %vm4506_vm14 = vcmp.ne.s32.totalorder %v2435_v56, %v2416_v45 }
 0x1b9   : > { %vm3810_vm6 = vmor %vm880_vm9, %vm945_vm10  ;;  %2041 = vmatpush3.msk.msra.mxu0 %vm4506_vm14, %v3293_v15  ;;  %1935 = vmatprep.subr.mxu1 %v4199_v20  ;;  %vm4508_vm9 = vnez %v4487_v1  ;;  %vm4509_vm10 = vcmp.eq.s32.totalorder %v2416_v45, 0  ;;  %vm862_vm14 = vcmp.lt.s32.totalorder %v2405_v21, %v2485_v18 }
 0x1ba   : > { %vm912_vm13 = vmand %vm4507_vm5, %vm896_vm8  ;;  %2042 = vmatprep.subr.mxu0 %v4199_v20  ;;  %1936 = vmatpush3.msk.msra.mxu1 %vm4508_vm9, %v2228_v26  ;;  %vm4512_vm8 = vcmp.ne.s32.totalorder %v2466_v7, %v2416_v45  ;;  %vm927_vm9 = vcmp.lt.s32.totalorder %v2405_v21, %v2488_v19 }
 0x1bb   : > { %vm3831_vm3 = vmand %vm4509_vm10, %vm863_vm15  ;;  %2043 = vmatpush3.msk.msra.mxu0 %vm4512_vm8, %v3356_v13  ;;  %1937 = vmatprep.subr.mxu1 %v4199_v20  ;;  %vm4513_vm10 = vcmp.ne.s32.totalorder %v4222_v25, %v2416_v45  ;;  %vm4514_vm8 = vcmp.eq.s32.totalorder %v2416_v45, 0 }
 0x1bc   : > { %vm911_vm7 = vmand %vm4507_vm5, %vm895_vm2  ;;  %2044 = vmatprep.subr.mxu0 %v4199_v20  ;;  %1938 = vmatpush3.msk.msra.mxu1 %vm3787_vm12, %v2228_v26 }
 0x1bd   : > { %vm944_vm15 = vmand %vm912_vm13, %vm928_vm1  ;;  %2045 = vmatpush3.msk.msra.mxu0 %vm4513_vm10, %v3392_v8  ;;  %1939 = vmatprep.subr.mxu1 %v4199_v20  ;;  %vm4515_vm13 = vcmp.ne.s32.totalorder %v4240_v41, %v2416_v45  ;;  %vm4134_vm10 = vcmask 9216  }
 0x1be   : > { %vm878_vm2 = vmand %vm4514_vm8, %vm862_vm14  ;;  %2046 = vmatprep.subr.mxu0 %v4199_v20  ;;  %1940 = vmatpush3.msk.msra.mxu1 %vm3800_vm4, %v2228_v26  ;;  %vm4522_vm14 = vnez %v4365_v34  ;;  %996 = vst.msk [vmem:[%s3907_s15] sm:$0x3] %vm4134_vm10, %v4199_v20  ;;  %vm4524_vm8 = vnez %v4398_v23 }
 0x1bf   : > { %vm943_vm5 = vmand %vm911_vm7, %vm927_vm9  ;;  %2047 = vmatpush3.msk.msra.mxu0 %vm4515_vm13, %v3432_v46  ;;  %1941 = vmatprep.subr.mxu1 %v4199_v20  ;;  %vm4518_vm7 = vcmp.ne.s32.totalorder %v4257_v10, %v2416_v45  ;;  %997 = vst.msk [vmem:[%s3907_s15 + $0x2] sm:$0x3] %vm4134_vm10, %v4199_v20  ;;  %vm4527_vm13 = vnez %v4429_v5 }
 0x1c0   : > { %vm3868_vm1 = vmor %vm3831_vm3, %vm944_vm15  ;;  %2048 = vmatprep.subr.mxu0 %v4199_v20  ;;  %1942 = vmatpush3.msk.msra.mxu1 %vm3810_vm6, %v2228_v26  ;;  %vm4521_vm3 = vcmp.ne.s32.totalorder %v2405_v21, %v2416_v45  ;;  %vm4523_vm15 = vmmov 0   ;;  %998 = vst.msk [vmem:[%s3907_s15 + $0x4] sm:$0x3] %vm4134_vm10, %v4199_v20  ;;  %vm4531_vm10 = vnez %v4480_v17 }
 0x1c1   : > { %2049 = vmatpush3.msk.msra.mxu0 %vm4518_vm7, %v3469_v16  ;;  %1943 = vmatprep.subr.mxu1 %v4199_v20  ;;  %vm3881_vm9 = vmor %vm878_vm2, %vm943_vm5  ;;  %vm4525_vm2 = vnez %v4411_v59  ;;  %vm4526_vm5 = vnez %v4421_v57  ;;  %vm4528_vm7 = vnez %v4437_v14 }
 0x1c2   : > { %2050 = vmatprep.subr.mxu0 %v4199_v20  ;;  %1944 = vmatpush3.msk.msra.mxu1 %vm3868_vm1, %v2228_v26 }
 0x1c3   : > { %2051 = vmatpush3.msk.msra.mxu0 %vm4521_vm3, %v3506_v47  ;;  %1945 = vmatprep.subr.mxu1 %v4199_v20  ;;  %vm4529_vm3 = vnez %v4448_v40 }
 0x1c4   : > { %2053 = vmatmul.mubr.msk.f32.vlgmr.msra.gmra.mxu0 %vm4522_vm14, %v2228_v26  ;;  %1946 = vmatpush3.msk.msra.mxu1 %vm3881_vm9, %v2228_v26  ;;  %vm4530_vm14 = vnez %v4455_v30 }
 0x1c5   : > { %1947 = vmatprep.mubr.msk.f32.mxu1 %vm4523_vm15, %v4199_v20  ;;  %1985 = vmatprep.subr.mxu1 %v4199_v20  ;;  %v999_v10 = vld [vmem:[%s3907_s15] sm:$0x3] }
 0x1c6   : > { %v1616_v31 = vld [vmem:[%s3907_s15 + $0x2] sm:$0x3] }
 0x1c7   : > { %v1651_v13 = vld [vmem:[%s3907_s15 + $0x4] sm:$0x3] }
 0x258   : > { %v1082_v21 = vpop.f32.mrf.mxu1 }
 0x259   : > { %1948 = vmatmul.mubr.f32.vlgmr.msra.gmra.mxu1 %v1082_v21 }
 0x25a   : > { %1986 = vmatpush3.msk.msra.mxu1 %vm4524_vm8, %v2228_v26  ;;  %v1914_v45 = vpop.f32.mrf.mxu1  ;;  %2017 = vmatprep.mubr.msk.f32.mxu1 %vm4523_vm15, %v4199_v20 }
 0x25b   : > { %v1243_v18 = vpop.f32.mrf.mxu0  ;;  %1987 = vmatprep.subr.mxu1 %v4199_v20 }
 0x25c   : > { %1988 = vmatpush3.msk.msra.mxu1 %vm4525_vm2, %v2228_v26 }
 0x25d   : > { %v1984_v19 = vpop.f32.mrf.mxu0  ;;  %1989 = vmatprep.subr.mxu1 %v4199_v20 }
 0x25e   : > { %1990 = vmatpush3.msk.msra.mxu1 %vm4526_vm5, %v2228_v26 }
 0x25f   : > { %1991 = vmatprep.subr.mxu1 %v4199_v20 }
 0x260   : > { %1992 = vmatpush3.msk.msra.mxu1 %vm4527_vm13, %v2228_v26 }
 0x261   : > { %1993 = vmatprep.subr.mxu1 %v4199_v20 }
 0x262   : > { %1994 = vmatpush3.msk.msra.mxu1 %vm4528_vm7, %v2228_v26 }
 0x263   : > { %1995 = vmatprep.subr.mxu1 %v4199_v20 }
 0x264   : > { %1996 = vmatpush3.msk.msra.mxu1 %vm4529_vm3, %v2228_v26 }
 0x265   : > { %1997 = vmatprep.subr.mxu1 %v4199_v20 }
 0x266   : > { %1998 = vmatpush3.msk.msra.mxu1 %vm4530_vm14, %v2228_v26  ;;  %vm4532_vm14 = vnez %v4487_v1 }
 0x267   : > { %1999 = vmatprep.subr.mxu1 %v4199_v20 }
 0x268   : > { %2000 = vmatpush3.msk.msra.mxu1 %vm3641_vm11, %v2228_v26 }
 0x269   : > { %2001 = vmatprep.subr.mxu1 %v4199_v20 }
 0x26a   : > { %2002 = vmatpush3.msk.msra.mxu1 %vm3670_vm0, %v2228_v26 }
 0x26b   : > { %2003 = vmatprep.subr.mxu1 %v4199_v20 }
 0x26c   : > { %2004 = vmatpush3.msk.msra.mxu1 %vm4531_vm10, %v2228_v26 }
 0x26d   : > { %2005 = vmatprep.subr.mxu1 %v4199_v20 }
 0x26e   : > { %2006 = vmatpush3.msk.msra.mxu1 %vm4532_vm14, %v2228_v26 }
 0x26f   : > { %2007 = vmatprep.subr.mxu1 %v4199_v20 }
 0x270   : > { %2008 = vmatpush3.msk.msra.mxu1 %vm3787_vm12, %v2228_v26 }
 0x271   : > { %2009 = vmatprep.subr.mxu1 %v4199_v20 }
 0x272   : > { %2010 = vmatpush3.msk.msra.mxu1 %vm3800_vm4, %v2228_v26 }
 0x273   : > { %2011 = vmatprep.subr.mxu1 %v4199_v20 }
 0x274   : > { %2012 = vmatpush3.msk.msra.mxu1 %vm3810_vm6, %v2228_v26 }
 0x275   : > { %2013 = vmatprep.subr.mxu1 %v4199_v20 }
 0x276   : > { %2014 = vmatpush3.msk.msra.mxu1 %vm3868_vm1, %v2228_v26 }
 0x277   : > { %2015 = vmatprep.subr.mxu1 %v4199_v20 }
 0x278   : > { %2016 = vmatpush3.msk.msra.mxu1 %vm3881_vm9, %v2228_v26 }
 0x279   : > { %2018 = vmatmul.mubr.f32.vlgmr.msra.gmra.mxu1 %v1243_v18  ;;  %2055 = vmatprep.subr.mxu1 %v4199_v20 }
 0x27a   : > { %2056 = vmatpush3.msk.msra.mxu1 %vm4524_vm8, %v2228_v26  ;;  %2087 = vmatprep.mubr.msk.f32.mxu1 %vm4523_vm15, %v4199_v20  ;;  %vm4533_vm15 = vnez %v4455_v30 }
 0x27b   : > { %2057 = vmatprep.subr.mxu1 %v4199_v20 }
 0x27c   : > { %2058 = vmatpush3.msk.msra.mxu1 %vm4525_vm2, %v2228_v26 }
 0x27d   : > { %2059 = vmatprep.subr.mxu1 %v4199_v20 }
 0x27e   : > { %2060 = vmatpush3.msk.msra.mxu1 %vm4526_vm5, %v2228_v26 }
 0x27f   : > { %2061 = vmatprep.subr.mxu1 %v4199_v20 }
 0x280   : > { %2062 = vmatpush3.msk.msra.mxu1 %vm4527_vm13, %v2228_v26 }
 0x281   : > { %2063 = vmatprep.subr.mxu1 %v4199_v20 }
 0x282   : > { %2064 = vmatpush3.msk.msra.mxu1 %vm4528_vm7, %v2228_v26 }
 0x283   : > { %2065 = vmatprep.subr.mxu1 %v4199_v20 }
 0x284   : > { %v1403_v25 = vpop.f32.mrf.mxu0  ;;  %2066 = vmatpush3.msk.msra.mxu1 %vm4529_vm3, %v2228_v26 }
 0x285   : > { %2067 = vmatprep.subr.mxu1 %v4199_v20 }
 0x286   : > { %v2054_v41 = vpop.f32.mrf.mxu0  ;;  %2068 = vmatpush3.msk.msra.mxu1 %vm4533_vm15, %v2228_v26 }
 0x287   : > { %2069 = vmatprep.subr.mxu1 %v4199_v20 }
 0x288   : > { %2070 = vmatpush3.msk.msra.mxu1 %vm3641_vm11, %v2228_v26  ;;  %vm4534_vm11 = vcmask 9216  }
 0x289   : > { %2071 = vmatprep.subr.mxu1 %v4199_v20 }
 0x28a   : > { %2072 = vmatpush3.msk.msra.mxu1 %vm3670_vm0, %v2228_v26  ;;  %vm4535_vm0 = vmmov %vm4534_vm11 }
 0x28b   : > { %2073 = vmatprep.subr.mxu1 %v4199_v20 }
 0x28c   : > { %2074 = vmatpush3.msk.msra.mxu1 %vm4531_vm10, %v2228_v26 }
 0x28d   : > { %2075 = vmatprep.subr.mxu1 %v4199_v20 }
 0x28e   : > { %2076 = vmatpush3.msk.msra.mxu1 %vm4532_vm14, %v2228_v26 }
 0x28f   : > { %2077 = vmatprep.subr.mxu1 %v4199_v20 }
 0x290   : > { %2078 = vmatpush3.msk.msra.mxu1 %vm3787_vm12, %v2228_v26  ;;  %vm4536_vm12 = vmmov %vm4535_vm0 }
 0x291   : > { %2079 = vmatprep.subr.mxu1 %v4199_v20 }
 0x292   : > { %2080 = vmatpush3.msk.msra.mxu1 %vm3800_vm4, %v2228_v26 }
 0x293   : > { %2081 = vmatprep.subr.mxu1 %v4199_v20 }
 0x294   : > { %2082 = vmatpush3.msk.msra.mxu1 %vm3810_vm6, %v2228_v26 }
 0x295   : > { %2083 = vmatprep.subr.mxu1 %v4199_v20 }
 0x296   : > { %2084 = vmatpush3.msk.msra.mxu1 %vm3868_vm1, %v2228_v26 }
 0x297   : > { %2085 = vmatprep.subr.mxu1 %v4199_v20 }
 0x298   : > { %2086 = vmatpush3.msk.msra.mxu1 %vm3881_vm9, %v2228_v26 }
 0x299   : > { %2088 = vmatmul.mubr.f32.vlgmr.msra.gmra.mxu1 %v1403_v25 }
 0x319   : > { %v1152_v4 = vpop.f32.mrf.mxu1 }
 0x31a   : > { %v1156_v38 = vadd.f32 %v1152_v4, %v999_v10 }
 0x31b   : > { %v1949_v48 = vpop.f32.mrf.mxu1 }
 0x31c   : > { %1158 = vst.msk [vmem:[%s3907_s15] sm:$0x3] %vm4534_vm11, %v1156_v38 }
 0x339   : > { %v1313_v32 = vpop.f32.mrf.mxu1 }
 0x33a   : > { %v1317_v15 = vadd.f32 %v1616_v31, %v1313_v32 }
 0x33b   : > { %v2019_v34 = vpop.f32.mrf.mxu1 }
 0x33c   : > { %1650 = vst.msk [vmem:[%s3907_s15 + $0x2] sm:$0x3] %vm4535_vm0, %v1317_v15 }
 0x359   : > { %v1473_v20 = vpop.f32.mrf.mxu1 }
 0x35a   : > { %v1477_v42 = vadd.f32 %v1651_v13, %v1473_v20 }
 0x35b   : > { %v2089_v63 = vpop.f32.mrf.mxu1 }
 0x35c   : > { %1685 = vst.msk [vmem:[%s3907_s15 + $0x4] sm:$0x3] %vm4536_vm12, %v1477_v42 }
 0x35d PF: > { %s20_s22 = sadd.s32 1, %s2222_s22   ;;  %s4537_s20 = smov %s2218_s21 }
 0x35e   : > { %p17_p10 = scmp.ge.s32.totalorder %s20_s22, 6   ;;  %s4538_s21 = smov %s4540_s0 }
 0x360   :  { %19 = sbr.rel (!%p17_p10) target bundleno = 17 (0x11), region = 75 }

</bundles_post_ra>
